<compile_context>
chip_gen: v5e
topology: v5e:2x2
jax: 0.10.0
libtpu: 0.0.40
codegen_flags: <defaults>
</compile_context>

<pallas_src>
import functools

import numpy as np
import jax
import jax.numpy as jnp
from jax import lax
from jax.experimental import pallas as pl
from jax.experimental.pallas import tpu as pltpu


# ----------------- host-side (one-time) constant construction ---------------

def _poolup_pattern(n, k):
    # 1-D 0/1 membership pattern of AvgPool(k, stride=k) + nearest Upsample(k):
    # out[i] depends on in[j] iff i//k == j//k (the 1/k factor is folded away).
    idx = np.arange(n)
    return (idx[:, None] // k == idx[None, :] // k).astype(np.float32)


def _samepool_pattern(n, k):
    # 1-D 0/1 pattern of AvgPool(k, stride=1, pad=k//2, count_include_pad=True)
    idx = np.arange(n)
    return (np.abs(idx[:, None] - idx[None, :]) <= k // 2).astype(np.float32)


def _build_constants(params, pool_sizes, dim):
    H = W = dim
    HW = H * W
    wc = np.asarray(params["wc"], np.float32)            # (C_out, C_in)
    bc = np.asarray(params["bc"], np.float32)            # (C_out,)
    wg = np.asarray(params["wg"], np.float32)            # (4, red, C_out)
    bg = np.asarray(params["bg"], np.float32)            # (4, red)
    wf = np.asarray(params["wf"], np.float32)            # (C_in, 1, 3, 3)
    bf = np.asarray(params["bf"], np.float32)            # (C_in,)
    gamma = np.asarray(params["gamma"], np.float32)      # (H, W)
    beta = np.asarray(params["beta"], np.float32)        # (H, W)

    C_out, C_in = wc.shape
    red = wg.shape[1]

    # exact 0/1 pooling patterns (bf16-exact); orientation: pooled = v @ K01
    pats = [_poolup_pattern(H, pool_sizes[0])] + \
           [_samepool_pattern(H, k) for k in pool_sizes[1:]]
    kbig = np.stack([np.kron(p, p).T for p in pats], axis=0)      # (4, HW, HW)
    scales = np.array([1.0 / (k * k) for k in pool_sizes], np.float32)

    # Commute reduce-conv ahead of pooling and fold it (plus the 1/k^2 pool
    # scale) into the 1x1 conv:  [y ; v] = W_stack @ x + b_stack, where
    # v_p = (wg[p]/k_p^2) @ y  and  glob_p = 0/1-pool_p(v_p) + bg[p].
    wgs = (wg * scales[:, None, None]).reshape(4 * red, C_out)    # (4*red, C_out)
    w_stack = np.concatenate([wc, wgs @ wc], axis=0)              # (C_in, C_in)
    b_stack = np.concatenate([bc, wgs @ bc], axis=0).reshape(C_in, 1)
    bg_stack = bg.reshape(4 * red, 1)

    # hi/lo bf16 split of the fused 1x1 weight (explicit ~f32 MXU precision)
    w_f32 = jnp.asarray(w_stack, jnp.float32)
    w_hi = w_f32.astype(jnp.bfloat16)
    w_lo = (w_f32 - w_hi.astype(jnp.float32)).astype(jnp.bfloat16)

    # per-tap (weight * zero-padding-mask) tables for the depthwise 3x3 conv
    ii, jj = np.meshgrid(np.arange(H), np.arange(W), indexing="ij")
    masks = np.zeros((9, HW), np.float32)
    for ka in range(3):
        for kb in range(3):
            ok = (ii + (ka - 1) >= 0) & (ii + (ka - 1) < H) & \
                 (jj + (kb - 1) >= 0) & (jj + (kb - 1) < W)
            masks[ka * 3 + kb] = ok.reshape(HW).astype(np.float32)
    wf_flat = wf.reshape(C_in, 9)
    wm = wf_flat.T[:, :, None] * masks[:, None, :]                # (9, C_in, HW)

    consts = (
        w_hi,                                                     # (C_in, C_in) bf16
        w_lo,                                                     # (C_in, C_in) bf16
        jnp.asarray(b_stack),                                     # (C_in, 1)
        jnp.asarray(kbig, dtype=jnp.bfloat16),                    # (4, HW, HW) 0/1
        jnp.asarray(bg_stack),                                    # (4*red, 1)
        jnp.asarray(wm),                                          # (9, C_in, HW)
        jnp.asarray(bf.reshape(C_in, 1)),                         # (C_in, 1)
        jnp.asarray(gamma.reshape(1, HW)),                        # (1, HW)
        jnp.asarray(beta.reshape(1, HW)),                         # (1, HW)
    )
    return consts, C_in, C_out, red


# --------------------------------- kernel -----------------------------------

def pvf_kernel(x_ref, whi_ref, wlo_ref, b_ref, kbig_ref, bg_ref, wm_ref,
               bf_ref, gamma_ref, beta_ref, out_ref, *, c_out, red, h, w, eps):
    f32, bf16 = jnp.float32, jnp.bfloat16
    hw = h * w

    x = x_ref[...]                                          # (C_in, HW) f32
    x_hi = x.astype(bf16)
    x_lo = (x - x_hi.astype(f32)).astype(bf16)
    w_hi = whi_ref[...]
    w_lo = wlo_ref[...]

    # fused [1x1 conv ; pre-scaled reduce-convs], hi/lo bf16 dots (~f32 exact)
    yv = (jnp.dot(w_hi, x_hi, preferred_element_type=f32)
          + jnp.dot(w_hi, x_lo, preferred_element_type=f32)
          + jnp.dot(w_lo, x_hi, preferred_element_type=f32)
          + jnp.dot(w_lo, x_lo, preferred_element_type=f32)
          + b_ref[...])                                     # (C_in, HW)
    y = yv[:c_out, :]                                       # (C_out, HW)

    # per-branch spatial pooling of the already channel-reduced rows; the 0/1
    # Kronecker operators are bf16-exact, hi/lo split of v keeps ~f32 accuracy
    parts = [y]
    for p in range(4):
        vp = yv[c_out + p * red:c_out + (p + 1) * red, :]   # (red, HW) f32
        vp_hi = vp.astype(bf16)
        vp_lo = (vp - vp_hi.astype(f32)).astype(bf16)
        kp = kbig_ref[p]                                    # (HW, HW) 0/1 bf16
        gp = (jnp.dot(vp_hi, kp, preferred_element_type=f32)
              + jnp.dot(vp_lo, kp, preferred_element_type=f32))
        parts.append(gp + bg_ref[p * red:(p + 1) * red, :])
    # torch.cat([y, glob1..4], dim=1) is already the natural per-batch layout
    z = jnp.concatenate(parts, axis=0)                      # (C_in, HW)

    # depthwise 3x3 conv: lane rolls + precomputed (weight * zero-pad-mask)
    acc = z * wm_ref[4]                                     # centre tap
    for ka in range(3):
        for kb in range(3):
            t = ka * 3 + kb
            if t == 4:
                continue
            off = (ka - 1) * w + (kb - 1)                   # flat source offset
            acc = acc + pltpu.roll(z, (-off) % hw, axis=1) * wm_ref[t]
    fc = acc + bf_ref[...]

    # LayerNorm over the (H, W) plane (biased variance), per channel
    mu = jnp.mean(fc, axis=1, keepdims=True)
    cen = fc - mu
    var = jnp.mean(cen * cen, axis=1, keepdims=True)
    out = cen * lax.rsqrt(var + eps) * gamma_ref[...] + beta_ref[...]
    out_ref[...] = out.astype(out_ref.dtype)                # single lane-dense store


# ------------------------------ wrapper --------------------------------------

def make_pvf(params, pool_sizes, dim):
    """One-time constant construction; returns a jitted forward function."""
    consts, C_in, C_out, red = _build_constants(params, pool_sizes, dim)
    H = W = dim
    HW = H * W
    kernel = functools.partial(pvf_kernel, c_out=C_out, red=red,
                               h=H, w=W, eps=1e-5)

    const_specs = [
        pl.BlockSpec((C_in, C_in), lambda b: (0, 0)),       # w_hi
        pl.BlockSpec((C_in, C_in), lambda b: (0, 0)),       # w_lo
        pl.BlockSpec((C_in, 1), lambda b: (0, 0)),          # b_stack
        pl.BlockSpec((4, HW, HW), lambda b: (0, 0, 0)),     # kbig (0/1)
        pl.BlockSpec((4 * red, 1), lambda b: (0, 0)),       # bg
        pl.BlockSpec((9, C_in, HW), lambda b: (0, 0, 0)),   # wm
        pl.BlockSpec((C_in, 1), lambda b: (0, 0)),          # bf
        pl.BlockSpec((1, HW), lambda b: (0, 0)),            # gamma
        pl.BlockSpec((1, HW), lambda b: (0, 0)),            # beta
    ]

    @jax.jit
    def forward(x):
        B = x.shape[0]
        x2 = x.reshape(B * C_in, HW)
        out = pl.pallas_call(
            kernel,
            out_shape=jax.ShapeDtypeStruct((B * C_in, HW), x.dtype),
            grid_spec=pltpu.PrefetchScalarGridSpec(
                num_scalar_prefetch=0,
                grid=(B,),                                  # one batch per step
                in_specs=[pl.BlockSpec((C_in, HW), lambda b: (b, 0))] + const_specs,
                out_specs=pl.BlockSpec((C_in, HW), lambda b: (b, 0)),
            ),
            compiler_params=pltpu.CompilerParams(
                dimension_semantics=("parallel",),          # megacore / v7x
                vmem_limit_bytes=8 * 1024 * 1024,           # footprint ~1.5 MiB
            ),
        )(x2, *consts)
        return out.reshape(B, C_in, H, W)

    return forward


# --------------------------- pure-JAX reference ------------------------------

def pvf_reference(x, params, pool_sizes):
    P = lax.Precision.HIGHEST
    wc, bc = params["wc"], params["bc"]
    wg, bg = params["wg"], params["bg"]
    wf, bf = params["wf"], params["bf"]
    gamma, beta = params["gamma"], params["beta"]
    C_in = x.shape[1]

    y = jnp.einsum('oc,bchw->bohw', wc, x, precision=P) + bc[None, :, None, None]

    k0 = pool_sizes[0]
    p1 = lax.reduce_window(y, 0.0, lax.add, (1, 1, k0, k0), (1, 1, k0, k0),
                           'VALID') / (k0 * k0)
    p1 = jnp.repeat(jnp.repeat(p1, k0, axis=2), k0, axis=3)   # nearest upsample
    pools = [p1]
    for k in pool_sizes[1:]:
        r = k // 2
        s = lax.reduce_window(y, 0.0, lax.add, (1, 1, k, k), (1, 1, 1, 1),
                              ((0, 0), (0, 0), (r, r), (r, r)))
        pools.append(s / (k * k))   # count_include_pad=True

    globs = [jnp.einsum('rc,bchw->brhw', wg[p], pools[p], precision=P)
             + bg[p][None, :, None, None] for p in range(4)]
    concat = jnp.concatenate([y] + globs, axis=1)

    fc = lax.conv_general_dilated(
        concat, wf, (1, 1), ((1, 1), (1, 1)),
        dimension_numbers=('NCHW', 'OIHW', 'NCHW'),
        feature_group_count=C_in, precision=P) + bf[None, :, None, None]

    mu = jnp.mean(fc, axis=(2, 3), keepdims=True)
    var = jnp.mean((fc - mu) ** 2, axis=(2, 3), keepdims=True)
    return (fc - mu) * lax.rsqrt(var + 1e-5) * gamma[None, None] + beta[None, None]


# ---------------------------------- main --------------------------------------

if __name__ == "__main__":
    B, C_in, H = 2, 16, 16           # dim = H = W = 16
    pool_sizes = (2, 3, 5, 7)        # pool_sizes[0] divides dim; others odd
    C_out, red = C_in // 2, C_in // 8

    key = jax.random.PRNGKey(0)
    ks = jax.random.split(key, 10)
    params = dict(
        wc=jax.random.normal(ks[0], (C_out, C_in), jnp.float32) * 0.25,
        bc=jax.random.normal(ks[1], (C_out,), jnp.float32) * 0.1,
        wg=jax.random.normal(ks[2], (4, red, C_out), jnp.float32) * 0.35,
        bg=jax.random.normal(ks[3], (4, red), jnp.float32) * 0.1,
        wf=jax.random.normal(ks[4], (C_in, 1, 3, 3), jnp.float32) * 0.3,
        bf=jax.random.normal(ks[5], (C_in,), jnp.float32) * 0.1,
        gamma=jax.random.normal(ks[6], (H, H), jnp.float32) * 0.5 + 1.0,
        beta=jax.random.normal(ks[7], (H, H), jnp.float32) * 0.1,
    )
    x = jax.random.normal(ks[8], (B, C_in, H, H), jnp.float32)

    pvf = make_pvf(params, pool_sizes, H)     # one-time constant build + jit
    out = jax.block_until_ready(pvf(x))
    assert out.shape == (B, C_in, H, H)

    ref = pvf_reference(x, params, pool_sizes)
    diff = jnp.abs(out - ref)
    # Channels [0, C_out): 1x1 conv (hi/lo bf16, ~f32) -> roll-dwconv -> LN.
    y_diff = float(jnp.max(diff[:, :C_out]))
    # Channels [C_out, C_in): additionally go through the exact-0/1 pool matmul
    # (hi/lo split); LayerNorm over smooth pooled maps slightly amplifies the
    # residual rounding, hence the slightly looser (but now f32-level) bound.
    g_diff = float(jnp.max(diff[:, C_out:]))
    assert y_diff < 1e-3, f"y-path mismatch, max abs diff={y_diff}"
    assert g_diff < 3e-3, f"glob-path mismatch, max abs diff={g_diff}"
    print("KERNEL_OK")
</pallas_src>

<mosaic_0001>
module attributes {stable_mosaic.version = 11 : i64} {
  func.func @pvf_kernel(%arg0: i32, %arg1: memref<16x256xf32, #tpu.memory_space<vmem>>, %arg2: memref<16x16xbf16, #tpu.memory_space<vmem>>, %arg3: memref<16x16xbf16, #tpu.memory_space<vmem>>, %arg4: memref<16x1xf32, #tpu.memory_space<vmem>>, %arg5: memref<4x256x256xbf16, #tpu.memory_space<vmem>>, %arg6: memref<8x1xf32, #tpu.memory_space<vmem>>, %arg7: memref<9x16x256xf32, #tpu.memory_space<vmem>>, %arg8: memref<16x1xf32, #tpu.memory_space<vmem>>, %arg9: memref<1x256xf32, #tpu.memory_space<vmem>>, %arg10: memref<1x256xf32, #tpu.memory_space<vmem>>, %arg11: memref<16x256xf32, #tpu.memory_space<vmem>>) attributes {dimension_semantics = [#tpu.dimension_semantics<parallel>], iteration_bounds = array<i64: 2>, scalar_prefetch = 0 : i64, scratch_operands = 0 : i64, tpu.core_type = #tpu.core_type<tc>, window_params = [{transform_indices = @transform_0, window_bounds = array<i64: 16, 256>}, {pipeline_mode = #tpu.pipeline_mode<synchronous>, transform_indices = @transform_1, window_bounds = array<i64: 16, 16>}, {pipeline_mode = #tpu.pipeline_mode<synchronous>, transform_indices = @transform_2, window_bounds = array<i64: 16, 16>}, {pipeline_mode = #tpu.pipeline_mode<synchronous>, transform_indices = @transform_3, window_bounds = array<i64: 16, 1>}, {pipeline_mode = #tpu.pipeline_mode<synchronous>, transform_indices = @transform_4, window_bounds = array<i64: 4, 256, 256>}, {pipeline_mode = #tpu.pipeline_mode<synchronous>, transform_indices = @transform_5, window_bounds = array<i64: 8, 1>}, {pipeline_mode = #tpu.pipeline_mode<synchronous>, transform_indices = @transform_6, window_bounds = array<i64: 9, 16, 256>}, {pipeline_mode = #tpu.pipeline_mode<synchronous>, transform_indices = @transform_7, window_bounds = array<i64: 16, 1>}, {pipeline_mode = #tpu.pipeline_mode<synchronous>, transform_indices = @transform_8, window_bounds = array<i64: 1, 256>}, {pipeline_mode = #tpu.pipeline_mode<synchronous>, transform_indices = @transform_9, window_bounds = array<i64: 1, 256>}, {transform_indices = @transform_10, window_bounds = array<i64: 16, 256>}]} {
    %c0 = arith.constant 0 : index
    %c0_0 = arith.constant 0 : index
    %0 = vector.load %arg1[%c0, %c0_0] : memref<16x256xf32, #tpu.memory_space<vmem>>, vector<16x256xf32>
    %1 = arith.truncf %0 : vector<16x256xf32> to vector<16x256xbf16>
    %2 = arith.extf %1 : vector<16x256xbf16> to vector<16x256xf32>
    %3 = arith.subf %0, %2 : vector<16x256xf32>
    %4 = arith.truncf %3 : vector<16x256xf32> to vector<16x256xbf16>
    %c0_1 = arith.constant 0 : index
    %c0_2 = arith.constant 0 : index
    %5 = vector.load %arg2[%c0_1, %c0_2] : memref<16x16xbf16, #tpu.memory_space<vmem>>, vector<16x16xbf16>
    %c0_3 = arith.constant 0 : index
    %c0_4 = arith.constant 0 : index
    %6 = vector.load %arg3[%c0_3, %c0_4] : memref<16x16xbf16, #tpu.memory_space<vmem>>, vector<16x16xbf16>
    %cst = arith.constant dense<0.000000e+00> : vector<16x256xf32>
    %7 = tpu.matmul %5, %1, %cst {dimension_numbers = #tpu.dot_dimension_numbers<[1], [0], [0], [1], [0, 0, 1, 1], [], []>} : vector<16x16xbf16>, vector<16x256xbf16>, vector<16x256xf32> -> vector<16x256xf32>
    %cst_5 = arith.constant dense<0.000000e+00> : vector<16x256xf32>
    %8 = tpu.matmul %5, %4, %cst_5 {dimension_numbers = #tpu.dot_dimension_numbers<[1], [0], [0], [1], [0, 0, 1, 1], [], []>} : vector<16x16xbf16>, vector<16x256xbf16>, vector<16x256xf32> -> vector<16x256xf32>
    %9 = arith.addf %7, %8 : vector<16x256xf32>
    %cst_6 = arith.constant dense<0.000000e+00> : vector<16x256xf32>
    %10 = tpu.matmul %6, %1, %cst_6 {dimension_numbers = #tpu.dot_dimension_numbers<[1], [0], [0], [1], [0, 0, 1, 1], [], []>} : vector<16x16xbf16>, vector<16x256xbf16>, vector<16x256xf32> -> vector<16x256xf32>
    %11 = arith.addf %9, %10 : vector<16x256xf32>
    %cst_7 = arith.constant dense<0.000000e+00> : vector<16x256xf32>
    %12 = tpu.matmul %6, %4, %cst_7 {dimension_numbers = #tpu.dot_dimension_numbers<[1], [0], [0], [1], [0, 0, 1, 1], [], []>} : vector<16x16xbf16>, vector<16x256xbf16>, vector<16x256xf32> -> vector<16x256xf32>
    %13 = arith.addf %11, %12 : vector<16x256xf32>
    %c0_8 = arith.constant 0 : index
    %c0_9 = arith.constant 0 : index
    %14 = vector.load %arg4[%c0_8, %c0_9] : memref<16x1xf32, #tpu.memory_space<vmem>>, vector<16x1xf32>
    %15 = vector.broadcast %14 : vector<16x1xf32> to vector<16x256xf32>
    %16 = arith.addf %13, %15 : vector<16x256xf32>
    %17 = vector.extract_strided_slice %16 {offsets = [0, 0], sizes = [8, 256], strides = [1, 1]} : vector<16x256xf32> to vector<8x256xf32>
    %18 = vector.extract_strided_slice %16 {offsets = [8, 0], sizes = [2, 256], strides = [1, 1]} : vector<16x256xf32> to vector<2x256xf32>
    %19 = arith.truncf %18 : vector<2x256xf32> to vector<2x256xbf16>
    %20 = arith.extf %19 : vector<2x256xbf16> to vector<2x256xf32>
    %21 = arith.subf %18, %20 : vector<2x256xf32>
    %22 = arith.truncf %21 : vector<2x256xf32> to vector<2x256xbf16>
    %c0_10 = arith.constant 0 : index
    %c0_11 = arith.constant 0 : index
    %c0_12 = arith.constant 0 : index
    %23 = vector.load %arg5[%c0_10, %c0_11, %c0_12] : memref<4x256x256xbf16, #tpu.memory_space<vmem>>, vector<1x256x256xbf16>
    %24 = vector.shape_cast %23 : vector<1x256x256xbf16> to vector<256x256xbf16>
    %cst_13 = arith.constant dense<0.000000e+00> : vector<2x256xf32>
    %25 = tpu.matmul %19, %24, %cst_13 {dimension_numbers = #tpu.dot_dimension_numbers<[1], [0], [0], [1], [0, 0, 1, 1], [], []>} : vector<2x256xbf16>, vector<256x256xbf16>, vector<2x256xf32> -> vector<2x256xf32>
    %cst_14 = arith.constant dense<0.000000e+00> : vector<2x256xf32>
    %26 = tpu.matmul %22, %24, %cst_14 {dimension_numbers = #tpu.dot_dimension_numbers<[1], [0], [0], [1], [0, 0, 1, 1], [], []>} : vector<2x256xbf16>, vector<256x256xbf16>, vector<2x256xf32> -> vector<2x256xf32>
    %27 = arith.addf %25, %26 : vector<2x256xf32>
    %c0_15 = arith.constant 0 : index
    %c0_16 = arith.constant 0 : index
    %28 = vector.load %arg6[%c0_15, %c0_16] : memref<8x1xf32, #tpu.memory_space<vmem>>, vector<2x1xf32>
    %29 = vector.broadcast %28 : vector<2x1xf32> to vector<2x256xf32>
    %30 = arith.addf %27, %29 : vector<2x256xf32>
    %31 = vector.extract_strided_slice %16 {offsets = [10, 0], sizes = [2, 256], strides = [1, 1]} : vector<16x256xf32> to vector<2x256xf32>
    %32 = arith.truncf %31 : vector<2x256xf32> to vector<2x256xbf16>
    %33 = arith.extf %32 : vector<2x256xbf16> to vector<2x256xf32>
    %34 = arith.subf %31, %33 : vector<2x256xf32>
    %35 = arith.truncf %34 : vector<2x256xf32> to vector<2x256xbf16>
    %c1 = arith.constant 1 : index
    %c0_17 = arith.constant 0 : index
    %c0_18 = arith.constant 0 : index
    %36 = vector.load %arg5[%c1, %c0_17, %c0_18] : memref<4x256x256xbf16, #tpu.memory_space<vmem>>, vector<1x256x256xbf16>
    %37 = vector.shape_cast %36 : vector<1x256x256xbf16> to vector<256x256xbf16>
    %cst_19 = arith.constant dense<0.000000e+00> : vector<2x256xf32>
    %38 = tpu.matmul %32, %37, %cst_19 {dimension_numbers = #tpu.dot_dimension_numbers<[1], [0], [0], [1], [0, 0, 1, 1], [], []>} : vector<2x256xbf16>, vector<256x256xbf16>, vector<2x256xf32> -> vector<2x256xf32>
    %cst_20 = arith.constant dense<0.000000e+00> : vector<2x256xf32>
    %39 = tpu.matmul %35, %37, %cst_20 {dimension_numbers = #tpu.dot_dimension_numbers<[1], [0], [0], [1], [0, 0, 1, 1], [], []>} : vector<2x256xbf16>, vector<256x256xbf16>, vector<2x256xf32> -> vector<2x256xf32>
    %40 = arith.addf %38, %39 : vector<2x256xf32>
    %c2 = arith.constant 2 : index
    %c0_21 = arith.constant 0 : index
    %41 = vector.load %arg6[%c2, %c0_21] : memref<8x1xf32, #tpu.memory_space<vmem>>, vector<2x1xf32>
    %42 = vector.broadcast %41 : vector<2x1xf32> to vector<2x256xf32>
    %43 = arith.addf %40, %42 : vector<2x256xf32>
    %44 = vector.extract_strided_slice %16 {offsets = [12, 0], sizes = [2, 256], strides = [1, 1]} : vector<16x256xf32> to vector<2x256xf32>
    %45 = arith.truncf %44 : vector<2x256xf32> to vector<2x256xbf16>
    %46 = arith.extf %45 : vector<2x256xbf16> to vector<2x256xf32>
    %47 = arith.subf %44, %46 : vector<2x256xf32>
    %48 = arith.truncf %47 : vector<2x256xf32> to vector<2x256xbf16>
    %c2_22 = arith.constant 2 : index
    %c0_23 = arith.constant 0 : index
    %c0_24 = arith.constant 0 : index
    %49 = vector.load %arg5[%c2_22, %c0_23, %c0_24] : memref<4x256x256xbf16, #tpu.memory_space<vmem>>, vector<1x256x256xbf16>
    %50 = vector.shape_cast %49 : vector<1x256x256xbf16> to vector<256x256xbf16>
    %cst_25 = arith.constant dense<0.000000e+00> : vector<2x256xf32>
    %51 = tpu.matmul %45, %50, %cst_25 {dimension_numbers = #tpu.dot_dimension_numbers<[1], [0], [0], [1], [0, 0, 1, 1], [], []>} : vector<2x256xbf16>, vector<256x256xbf16>, vector<2x256xf32> -> vector<2x256xf32>
    %cst_26 = arith.constant dense<0.000000e+00> : vector<2x256xf32>
    %52 = tpu.matmul %48, %50, %cst_26 {dimension_numbers = #tpu.dot_dimension_numbers<[1], [0], [0], [1], [0, 0, 1, 1], [], []>} : vector<2x256xbf16>, vector<256x256xbf16>, vector<2x256xf32> -> vector<2x256xf32>
    %53 = arith.addf %51, %52 : vector<2x256xf32>
    %c4 = arith.constant 4 : index
    %c0_27 = arith.constant 0 : index
    %54 = vector.load %arg6[%c4, %c0_27] : memref<8x1xf32, #tpu.memory_space<vmem>>, vector<2x1xf32>
    %55 = vector.broadcast %54 : vector<2x1xf32> to vector<2x256xf32>
    %56 = arith.addf %53, %55 : vector<2x256xf32>
    %57 = vector.extract_strided_slice %16 {offsets = [14, 0], sizes = [2, 256], strides = [1, 1]} : vector<16x256xf32> to vector<2x256xf32>
    %58 = arith.truncf %57 : vector<2x256xf32> to vector<2x256xbf16>
    %59 = arith.extf %58 : vector<2x256xbf16> to vector<2x256xf32>
    %60 = arith.subf %57, %59 : vector<2x256xf32>
    %61 = arith.truncf %60 : vector<2x256xf32> to vector<2x256xbf16>
    %c3 = arith.constant 3 : index
    %c0_28 = arith.constant 0 : index
    %c0_29 = arith.constant 0 : index
    %62 = vector.load %arg5[%c3, %c0_28, %c0_29] : memref<4x256x256xbf16, #tpu.memory_space<vmem>>, vector<1x256x256xbf16>
    %63 = vector.shape_cast %62 : vector<1x256x256xbf16> to vector<256x256xbf16>
    %cst_30 = arith.constant dense<0.000000e+00> : vector<2x256xf32>
    %64 = tpu.matmul %58, %63, %cst_30 {dimension_numbers = #tpu.dot_dimension_numbers<[1], [0], [0], [1], [0, 0, 1, 1], [], []>} : vector<2x256xbf16>, vector<256x256xbf16>, vector<2x256xf32> -> vector<2x256xf32>
    %cst_31 = arith.constant dense<0.000000e+00> : vector<2x256xf32>
    %65 = tpu.matmul %61, %63, %cst_31 {dimension_numbers = #tpu.dot_dimension_numbers<[1], [0], [0], [1], [0, 0, 1, 1], [], []>} : vector<2x256xbf16>, vector<256x256xbf16>, vector<2x256xf32> -> vector<2x256xf32>
    %66 = arith.addf %64, %65 : vector<2x256xf32>
    %c6 = arith.constant 6 : index
    %c0_32 = arith.constant 0 : index
    %67 = vector.load %arg6[%c6, %c0_32] : memref<8x1xf32, #tpu.memory_space<vmem>>, vector<2x1xf32>
    %68 = vector.broadcast %67 : vector<2x1xf32> to vector<2x256xf32>
    %69 = arith.addf %66, %68 : vector<2x256xf32>
    %70 = tpu.concatenate %17, %30, %43, %56, %69 in 0 : vector<8x256xf32>, vector<2x256xf32>, vector<2x256xf32>, vector<2x256xf32>, vector<2x256xf32> -> vector<16x256xf32>
    %c4_33 = arith.constant 4 : index
    %c0_34 = arith.constant 0 : index
    %c0_35 = arith.constant 0 : index
    %71 = vector.load %arg7[%c4_33, %c0_34, %c0_35] : memref<9x16x256xf32, #tpu.memory_space<vmem>>, vector<1x16x256xf32>
    %72 = vector.shape_cast %71 : vector<1x16x256xf32> to vector<16x256xf32>
    %73 = arith.mulf %70, %72 : vector<16x256xf32>
    %c17_i32 = arith.constant 17 : i32
    %74 = tpu.dynamic_rotate %70 by %c17_i32 dim 1 : vector<16x256xf32>, i32 -> vector<16x256xf32>
    %c0_36 = arith.constant 0 : index
    %c0_37 = arith.constant 0 : index
    %c0_38 = arith.constant 0 : index
    %75 = vector.load %arg7[%c0_36, %c0_37, %c0_38] : memref<9x16x256xf32, #tpu.memory_space<vmem>>, vector<1x16x256xf32>
    %76 = vector.shape_cast %75 : vector<1x16x256xf32> to vector<16x256xf32>
    %77 = arith.mulf %74, %76 : vector<16x256xf32>
    %78 = arith.addf %73, %77 : vector<16x256xf32>
    %c16_i32 = arith.constant 16 : i32
    %79 = tpu.dynamic_rotate %70 by %c16_i32 dim 1 : vector<16x256xf32>, i32 -> vector<16x256xf32>
    %c1_39 = arith.constant 1 : index
    %c0_40 = arith.constant 0 : index
    %c0_41 = arith.constant 0 : index
    %80 = vector.load %arg7[%c1_39, %c0_40, %c0_41] : memref<9x16x256xf32, #tpu.memory_space<vmem>>, vector<1x16x256xf32>
    %81 = vector.shape_cast %80 : vector<1x16x256xf32> to vector<16x256xf32>
    %82 = arith.mulf %79, %81 : vector<16x256xf32>
    %83 = arith.addf %78, %82 : vector<16x256xf32>
    %c15_i32 = arith.constant 15 : i32
    %84 = tpu.dynamic_rotate %70 by %c15_i32 dim 1 : vector<16x256xf32>, i32 -> vector<16x256xf32>
    %c2_42 = arith.constant 2 : index
    %c0_43 = arith.constant 0 : index
    %c0_44 = arith.constant 0 : index
    %85 = vector.load %arg7[%c2_42, %c0_43, %c0_44] : memref<9x16x256xf32, #tpu.memory_space<vmem>>, vector<1x16x256xf32>
    %86 = vector.shape_cast %85 : vector<1x16x256xf32> to vector<16x256xf32>
    %87 = arith.mulf %84, %86 : vector<16x256xf32>
    %88 = arith.addf %83, %87 : vector<16x256xf32>
    %c1_i32 = arith.constant 1 : i32
    %89 = tpu.dynamic_rotate %70 by %c1_i32 dim 1 : vector<16x256xf32>, i32 -> vector<16x256xf32>
    %c3_45 = arith.constant 3 : index
    %c0_46 = arith.constant 0 : index
    %c0_47 = arith.constant 0 : index
    %90 = vector.load %arg7[%c3_45, %c0_46, %c0_47] : memref<9x16x256xf32, #tpu.memory_space<vmem>>, vector<1x16x256xf32>
    %91 = vector.shape_cast %90 : vector<1x16x256xf32> to vector<16x256xf32>
    %92 = arith.mulf %89, %91 : vector<16x256xf32>
    %93 = arith.addf %88, %92 : vector<16x256xf32>
    %c255_i32 = arith.constant 255 : i32
    %94 = tpu.dynamic_rotate %70 by %c255_i32 dim 1 : vector<16x256xf32>, i32 -> vector<16x256xf32>
    %c5 = arith.constant 5 : index
    %c0_48 = arith.constant 0 : index
    %c0_49 = arith.constant 0 : index
    %95 = vector.load %arg7[%c5, %c0_48, %c0_49] : memref<9x16x256xf32, #tpu.memory_space<vmem>>, vector<1x16x256xf32>
    %96 = vector.shape_cast %95 : vector<1x16x256xf32> to vector<16x256xf32>
    %97 = arith.mulf %94, %96 : vector<16x256xf32>
    %98 = arith.addf %93, %97 : vector<16x256xf32>
    %c241_i32 = arith.constant 241 : i32
    %99 = tpu.dynamic_rotate %70 by %c241_i32 dim 1 : vector<16x256xf32>, i32 -> vector<16x256xf32>
    %c6_50 = arith.constant 6 : index
    %c0_51 = arith.constant 0 : index
    %c0_52 = arith.constant 0 : index
    %100 = vector.load %arg7[%c6_50, %c0_51, %c0_52] : memref<9x16x256xf32, #tpu.memory_space<vmem>>, vector<1x16x256xf32>
    %101 = vector.shape_cast %100 : vector<1x16x256xf32> to vector<16x256xf32>
    %102 = arith.mulf %99, %101 : vector<16x256xf32>
    %103 = arith.addf %98, %102 : vector<16x256xf32>
    %c240_i32 = arith.constant 240 : i32
    %104 = tpu.dynamic_rotate %70 by %c240_i32 dim 1 : vector<16x256xf32>, i32 -> vector<16x256xf32>
    %c7 = arith.constant 7 : index
    %c0_53 = arith.constant 0 : index
    %c0_54 = arith.constant 0 : index
    %105 = vector.load %arg7[%c7, %c0_53, %c0_54] : memref<9x16x256xf32, #tpu.memory_space<vmem>>, vector<1x16x256xf32>
    %106 = vector.shape_cast %105 : vector<1x16x256xf32> to vector<16x256xf32>
    %107 = arith.mulf %104, %106 : vector<16x256xf32>
    %108 = arith.addf %103, %107 : vector<16x256xf32>
    %c239_i32 = arith.constant 239 : i32
    %109 = tpu.dynamic_rotate %70 by %c239_i32 dim 1 : vector<16x256xf32>, i32 -> vector<16x256xf32>
    %c8 = arith.constant 8 : index
    %c0_55 = arith.constant 0 : index
    %c0_56 = arith.constant 0 : index
    %110 = vector.load %arg7[%c8, %c0_55, %c0_56] : memref<9x16x256xf32, #tpu.memory_space<vmem>>, vector<1x16x256xf32>
    %111 = vector.shape_cast %110 : vector<1x16x256xf32> to vector<16x256xf32>
    %112 = arith.mulf %109, %111 : vector<16x256xf32>
    %113 = arith.addf %108, %112 : vector<16x256xf32>
    %c0_57 = arith.constant 0 : index
    %c0_58 = arith.constant 0 : index
    %114 = vector.load %arg8[%c0_57, %c0_58] : memref<16x1xf32, #tpu.memory_space<vmem>>, vector<16x1xf32>
    %115 = vector.broadcast %114 : vector<16x1xf32> to vector<16x256xf32>
    %116 = arith.addf %113, %115 : vector<16x256xf32>
    %cst_59 = arith.constant dense<0.000000e+00> : vector<16xf32>
    %117 = vector.multi_reduction <add>, %116, %cst_59 [1] : vector<16x256xf32> to vector<16xf32>
    %118 = vector.shape_cast %117 : vector<16xf32> to vector<16x1xf32>
    %cst_60 = arith.constant 2.560000e+02 : f32
    %119 = vector.broadcast %cst_60 : f32 to vector<16x1xf32>
    %120 = arith.divf %118, %119 : vector<16x1xf32>
    %121 = vector.broadcast %120 : vector<16x1xf32> to vector<16x256xf32>
    %122 = arith.subf %116, %121 : vector<16x256xf32>
    %123 = arith.mulf %122, %122 : vector<16x256xf32>
    %cst_61 = arith.constant dense<0.000000e+00> : vector<16xf32>
    %124 = vector.multi_reduction <add>, %123, %cst_61 [1] : vector<16x256xf32> to vector<16xf32>
    %125 = vector.shape_cast %124 : vector<16xf32> to vector<16x1xf32>
    %cst_62 = arith.constant 2.560000e+02 : f32
    %126 = vector.broadcast %cst_62 : f32 to vector<16x1xf32>
    %127 = arith.divf %125, %126 : vector<16x1xf32>
    %cst_63 = arith.constant 9.99999974E-6 : f32
    %128 = vector.broadcast %cst_63 : f32 to vector<16x1xf32>
    %129 = arith.addf %127, %128 : vector<16x1xf32>
    %130 = math.rsqrt %129 : vector<16x1xf32>
    %131 = vector.broadcast %130 : vector<16x1xf32> to vector<16x256xf32>
    %132 = arith.mulf %122, %131 : vector<16x256xf32>
    %c0_64 = arith.constant 0 : index
    %c0_65 = arith.constant 0 : index
    %133 = vector.load %arg9[%c0_64, %c0_65] : memref<1x256xf32, #tpu.memory_space<vmem>>, vector<1x256xf32>
    %134 = vector.broadcast %133 : vector<1x256xf32> to vector<16x256xf32>
    %135 = arith.mulf %132, %134 : vector<16x256xf32>
    %c0_66 = arith.constant 0 : index
    %c0_67 = arith.constant 0 : index
    %136 = vector.load %arg10[%c0_66, %c0_67] : memref<1x256xf32, #tpu.memory_space<vmem>>, vector<1x256xf32>
    %137 = vector.broadcast %136 : vector<1x256xf32> to vector<16x256xf32>
    %138 = arith.addf %135, %137 : vector<16x256xf32>
    %c0_68 = arith.constant 0 : index
    %c0_69 = arith.constant 0 : index
    %139 = vector.load %arg11[%c0_68, %c0_69] : memref<16x256xf32, #tpu.memory_space<vmem>>, vector<16x256xf32>
    tpu.vector_store %arg11[%c0_68, %c0_69], %138 {strides = array<i32>} : memref<16x256xf32, #tpu.memory_space<vmem>>, vector<16x256xf32>,
    return
  }
  func.func @transform_0(%arg0: i32) -> (i32, i32) {
    %c0_i32 = arith.constant 0 : i32
    %c0_i32_0 = arith.constant 0 : i32
    return %arg0, %c0_i32 : i32, i32
  }
  func.func @transform_1(%arg0: i32) -> (i32, i32) {
    %c0_i32 = arith.constant 0 : i32
    %c0_i32_0 = arith.constant 0 : i32
    %c0_i32_1 = arith.constant 0 : i32
    return %c0_i32, %c0_i32_0 : i32, i32
  }
  func.func @transform_2(%arg0: i32) -> (i32, i32) {
    %c0_i32 = arith.constant 0 : i32
    %c0_i32_0 = arith.constant 0 : i32
    %c0_i32_1 = arith.constant 0 : i32
    return %c0_i32, %c0_i32_0 : i32, i32
  }
  func.func @transform_3(%arg0: i32) -> (i32, i32) {
    %c0_i32 = arith.constant 0 : i32
    %c0_i32_0 = arith.constant 0 : i32
    %c0_i32_1 = arith.constant 0 : i32
    return %c0_i32, %c0_i32_0 : i32, i32
  }
  func.func @transform_4(%arg0: i32) -> (i32, i32, i32) {
    %c0_i32 = arith.constant 0 : i32
    %c0_i32_0 = arith.constant 0 : i32
    %c0_i32_1 = arith.constant 0 : i32
    %c0_i32_2 = arith.constant 0 : i32
    return %c0_i32, %c0_i32_0, %c0_i32_1 : i32, i32, i32
  }
  func.func @transform_5(%arg0: i32) -> (i32, i32) {
    %c0_i32 = arith.constant 0 : i32
    %c0_i32_0 = arith.constant 0 : i32
    %c0_i32_1 = arith.constant 0 : i32
    return %c0_i32, %c0_i32_0 : i32, i32
  }
  func.func @transform_6(%arg0: i32) -> (i32, i32, i32) {
    %c0_i32 = arith.constant 0 : i32
    %c0_i32_0 = arith.constant 0 : i32
    %c0_i32_1 = arith.constant 0 : i32
    %c0_i32_2 = arith.constant 0 : i32
    return %c0_i32, %c0_i32_0, %c0_i32_1 : i32, i32, i32
  }
  func.func @transform_7(%arg0: i32) -> (i32, i32) {
    %c0_i32 = arith.constant 0 : i32
    %c0_i32_0 = arith.constant 0 : i32
    %c0_i32_1 = arith.constant 0 : i32
    return %c0_i32, %c0_i32_0 : i32, i32
  }
  func.func @transform_8(%arg0: i32) -> (i32, i32) {
    %c0_i32 = arith.constant 0 : i32
    %c0_i32_0 = arith.constant 0 : i32
    %c0_i32_1 = arith.constant 0 : i32
    return %c0_i32, %c0_i32_0 : i32, i32
  }
  func.func @transform_9(%arg0: i32) -> (i32, i32) {
    %c0_i32 = arith.constant 0 : i32
    %c0_i32_0 = arith.constant 0 : i32
    %c0_i32_1 = arith.constant 0 : i32
    return %c0_i32, %c0_i32_0 : i32, i32
  }
  func.func @transform_10(%arg0: i32) -> (i32, i32) {
    %c0_i32 = arith.constant 0 : i32
    %c0_i32_0 = arith.constant 0 : i32
    return %arg0, %c0_i32 : i32, i32
  }
}

</mosaic_0001>

<bundles_post_ra>
// kernel: forward.1
= control target key start
LH: loop header
LB: loop body
LE: loop exit
PB: predicated region body
PF: predicated region fallthrough
CT: control target
= control target key end

     0   :  { %15 = vsyncpa [#allocation3], 0  ;;  %s3097_s13 = smov 0   ;;  %s3942_s0 = inlined_call_operand.vmem [shape: f32[32,256], index: 0, kind: input, shape index: {}]   ;;  %s3943_s1 = inlined_call_operand.vmem [shape: bf16[16,16], index: 1, kind: input, shape index: {}]   ;;  %s3944_s2 = inlined_call_operand.vmem [shape: bf16[16,16], index: 2, kind: input, shape index: {}]   ;;  %s3945_s3 = inlined_call_operand.vmem [shape: f32[16,1], index: 3, kind: input, shape index: {}]   ;;  %s3946_s4 = inlined_call_operand.hbm [shape: bf16[4,256,256], index: 4, kind: input, shape index: {}]   ;;  %s3947_s5 = inlined_call_operand.vmem [shape: f32[8,1], index: 5, kind: input, shape index: {}]   ;;  %s3948_s6 = inlined_call_operand.vmem [shape: f32[9,16,256], index: 6, kind: input, shape index: {}]   ;;  %s3949_s7 = inlined_call_operand.vmem [shape: f32[16,1], index: 7, kind: input, shape index: {}]   ;;  %s3950_s8 = inlined_call_operand.vmem [shape: f32[1,256], index: 8, kind: input, shape index: {}]   ;;  %s3951_s9 = inlined_call_operand.vmem [shape: f32[1,256], index: 9, kind: input, shape index: {}]   ;;  %s3952_s10 = inlined_call_operand.vmem [shape: f32[32,256], index: 10, kind: output, shape index: {}]  }
   0x1 LB: > { %s287_s16 = sshll.u32 %s3946_s4, 4  ;;  %s2240_s17 = sadd.s32 4294967295, %s3027_s13   ;;  %s3027_s13 = sphi %s3097_s13, %s21_s13   ;;  %s288_s16 = int_to_ptr.hbm [resolvable:$true] %s287_s16 }
   0x2   : > { %p2242_p0 = scmp.ge.s32.totalorder %s3027_s13, 1  ;;  %p267_p1 = scmp.lt.s32.totalorder %s3027_s13, 3 }
   0x3   : > { %p2955_p2 = scmp.eq.s32.totalorder %s2240_s17, 0  ;;  %s3029_s18 = smov [#allocation2]  }
   0x4   : > { %p268_p3 = pnand %p2242_p0, %p267_p1  ;;  %s289_s19 = sshll.u32 %s3029_s18, 4  ;;  %s290_s19 = int_to_ptr.vmem [resolvable:$true] %s289_s19 }
   0x5   : > { %s3030_s20 = smov 128   ;;  %s3031_s21 = smov 8  }
   0x6   : > { %p2951_p4 = pneg %p268_p3  ;;  %330 = sbr.rel (%p268_p3) target bundleno = 965 (0x3c5), region = 60 }
   0x8   : > { %p2952_p5 = pnand %p2955_p2, %p2951_p4 }
   0xa   : > { %2954 = dma.hbm_to_vmem [thread:$0]  (!%p2952_p5), %s288_s16, 16384, %s290_s19, [#allocation3], %s3030_s20, %s3030_s20, %s3031_s21  }
   0xb   : > { %3022 = dma.done.wait (%p2955_p2), [#allocation3], 16384  }
   0xc   : > { %3024 = vsyncadd (%p2955_p2), [#allocation3], 4294950912  ;;  %s2247_s22 = sshll.u32 %s2240_s17, 1  ;;  %v3032_v0 = vmov 0   ;;  %v554_v7 = vld [vmem:[%s3945_s3 + $0x8] sm:$0xff]  ;;  %v2817_v23 = vld [vmem:[%s3943_s1] sm:$0xff] }
   0xd   : > { %p372_p6 = scmp.lt.s32.totalorder %s2247_s22, 3  ;;  %2978 = vset.pattern.permute.xlu0 %v3032_v0  ;;  %2980 = vset.pattern.permute.xlu2 %v3032_v0  ;;  %v1820_v8 = vld [vmem:[%s3947_s5 + $0x6] sm:$0x3]  ;;  %vm411_vm0 = vcmask 130048   ;;  %v2327_v26 = vld [vmem:[#allocation2 + $0x70] sm:$0xf] }
   0xe   : > { %2979 = vset.pattern.permute.xlu1 %v3032_v0  ;;  %562 = vperm.xlu0 %2978, %v554_v7   ;;  %v2834_v27 = vld [vmem:[#allocation2 + $0x74] sm:$0xf0]  ;;  %v2391_v28 = vld [vmem:[#allocation2 + $0xf0] sm:$0xf]  ;;  %v2833_v30 = vld [vmem:[#allocation2 + $0x74] sm:$0xf] }
   0xf   : > { %s3954_s22 = smov (!%p372_p6, %s2247_s22), 3  ;;  %1823 = vperm.xlu2 %2980, %v1820_v8   ;;  %v2850_v29 = vld [vmem:[#allocation2 + $0xf4] sm:$0xf0]  ;;  %v2329_v31 = vld [vmem:[#allocation2 + $0x78] sm:$0xf0]  ;;  %v553_v35 = vld [vmem:[%s3945_s3] sm:$0xff]  ;;  %v3133_v36 = vor.u32 %v2834_v27, %v2327_v26 }
  0x10   : > { %s2815_s23 = sshll.u32 %s3954_s22, 4  ;;  %v2849_v32 = vld [vmem:[#allocation2 + $0xf4] sm:$0xf]  ;;  %v2393_v33 = vld [vmem:[#allocation2 + $0xf8] sm:$0xf0]  ;;  %v3135_v37 = vor.u32 %v2850_v29, %v2391_v28  ;;  %v3139_v40 = vor.u32 %v2833_v30, %v2329_v31  ;;  %s3034_s27 = smov 17  }
  0x11   : > { %s376_s26 = scalar_lea.vmem %s3942_s0, %s2815_s23  ;;  %v1194_v34 = vld [vmem:[%s3947_s5 + $0x2] sm:$0x3]  ;;  %v2832_v39 = vld [vmem:[#allocation2 + $0x64] sm:$0xf0]  ;;  %v3141_v41 = vor.u32 %v2849_v32, %v2393_v33  ;;  %v2831_v44 = vld [vmem:[#allocation2 + $0x64] sm:$0xf] }
  0x12   : > { %v386_v1 = vld [vmem:[%s376_s26] sm:$0xff]  ;;  %v387_v2 = vld [vmem:[%s376_s26 + $0x8] sm:$0xff]  ;;  %v388_v3 = vld [vmem:[%s376_s26 + $0x10] sm:$0xff]  ;;  %s3035_s28 = smov 15   ;;  %s3036_s29 = smov 127   ;;  %vm1846_vm1 = vcmask 1041408  }
  0x13   : > { %v389_v4 = vld [vmem:[%s376_s26 + $0x18] sm:$0xff]  ;;  %v390_v5 = vpack.c.bf16 %v387_v2, %v386_v1  ;;  %v2319_v38 = vld [vmem:[#allocation2 + $0x60] sm:$0xf]  ;;  %v2848_v43 = vld [vmem:[#allocation2 + $0xe4] sm:$0xf0]  ;;  %s3033_s26 = smov 16  }
  0x14   : > { %v391_v6 = vpack.c.bf16 %v389_v4, %v388_v3  ;;  %v2383_v42 = vld [vmem:[#allocation2 + $0xe0] sm:$0xf]  ;;  %v2321_v45 = vld [vmem:[#allocation2 + $0x68] sm:$0xf0]  ;;  %v2847_v46 = vld [vmem:[#allocation2 + $0xe4] sm:$0xf]  ;;  %v3145_v48 = vor.u32 %v2832_v39, %v2319_v38 }
  0x15   : > { %v445_v9 = vunpack.c.l.b16 %v390_v5  ;;  %v446_v10 = vunpack.c.h.b16 %v390_v5  ;;  %v392_v11 = vunpack.c.l.bf16 %v390_v5  ;;  %v393_v12 = vunpack.c.h.bf16 %v390_v5  ;;  %v2385_v47 = vld [vmem:[#allocation2 + $0xe8] sm:$0xf0]  ;;  %v2311_v50 = vld [vmem:[#allocation2 + $0x50] sm:$0xf]  ;;  %v2830_v51 = vld [vmem:[#allocation2 + $0x54] sm:$0xf0] }
  0x16   : > { %v447_v13 = vunpack.c.l.b16 %v391_v6  ;;  %v448_v14 = vunpack.c.h.b16 %v391_v6  ;;  %v394_v15 = vunpack.c.l.bf16 %v391_v6  ;;  %v395_v16 = vunpack.c.h.bf16 %v391_v6  ;;  %1197 = vperm.xlu0 %2978, %v1194_v34   ;;  %v2375_v54 = vld [vmem:[#allocation2 + $0xd0] sm:$0xf]  ;;  %v2846_v55 = vld [vmem:[#allocation2 + $0xd4] sm:$0xf0]  ;;  %v2829_v56 = vld [vmem:[#allocation2 + $0x54] sm:$0xf] }
  0x17   : > { %v396_v17 = vsub.f32 %v386_v1, %v392_v11  ;;  %v397_v18 = vsub.f32 %v387_v2, %v393_v12  ;;  %557 = vperm.xlu2 %2980, %v553_v35   ;;  %v3147_v49 = vor.u32 %v2848_v43, %v2383_v42  ;;  %v3151_v52 = vor.u32 %v2831_v44, %v2321_v45  ;;  %v2313_v57 = vld [vmem:[#allocation2 + $0x58] sm:$0xf0]  ;;  %v2845_v58 = vld [vmem:[#allocation2 + $0xd4] sm:$0xf]  ;;  %v2303_v62 = vld [vmem:[#allocation2 + $0x40] sm:$0xf] }
  0x18   : > { %v449_v19 = vpack.c.b16 %v447_v13, %v445_v9  ;;  %v450_v20 = vpack.c.b16 %v448_v14, %v446_v10  ;;  %v398_v21 = vsub.f32 %v388_v3, %v394_v15  ;;  %v399_v22 = vsub.f32 %v389_v4, %v395_v16  ;;  %v2377_v59 = vld [vmem:[#allocation2 + $0xd8] sm:$0xf0]  ;;  %v2828_v1 = vld [vmem:[#allocation2 + $0x44] sm:$0xf0]  ;;  %v2367_v2 = vld [vmem:[#allocation2 + $0xc0] sm:$0xf] }
  0x19   : > { %v3153_v53 = vor.u32 %v2847_v46, %v2385_v47  ;;  %v3157_v60 = vor.u32 %v2830_v51, %v2311_v50  ;;  %v3159_v61 = vor.u32 %v2846_v55, %v2375_v54  ;;  %v3163_v63 = vor.u32 %v2829_v56, %v2313_v57  ;;  %v2844_v3 = vld [vmem:[#allocation2 + $0xc4] sm:$0xf0]  ;;  %v2818_v4 = vld [vmem:[%s3944_s2] sm:$0xff]  ;;  %v2305_v6 = vld [vmem:[#allocation2 + $0x48] sm:$0xf0]  ;;  %s3037_s30 = smov 1  }
  0x1a   : > { %460 = vmatpush.bf16.msra.mxu2 %v449_v19  ;;  %474 = vmatpush.bf16.msra.mxu3 %v450_v20  ;;  %v400_v24 = vpack.c.bf16 %v398_v21, %v396_v17  ;;  %v401_v25 = vpack.c.bf16 %v399_v22, %v397_v18  ;;  %v3165_v0 = vor.u32 %v2845_v58, %v2377_v59  ;;  %v2827_v5 = vld [vmem:[#allocation2 + $0x44] sm:$0xf]  ;;  %v2369_v8 = vld [vmem:[#allocation2 + $0xc8] sm:$0xf0]  ;;  %v2295_v11 = vld [vmem:[#allocation2 + $0x30] sm:$0xf] }
  0x1b   : > { %v2843_v7 = vld [vmem:[#allocation2 + $0xc4] sm:$0xf]  ;;  %v3172_v9 = vor.u32 %v2828_v1, %v2303_v62  ;;  %v3174_v10 = vor.u32 %v2844_v3, %v2367_v2  ;;  %v2826_v12 = vld [vmem:[#allocation2 + $0x34] sm:$0xf0]  ;;  %v2359_v13 = vld [vmem:[#allocation2 + $0xb0] sm:$0xf]  ;;  %v3178_v15 = vor.u32 %v2827_v5, %v2305_v6 }
  0x1c   : > { %422 = vmatpush.bf16.msra.mxu0 %v400_v24  ;;  %436 = vmatpush.bf16.msra.mxu1 %v401_v25  ;;  %v2842_v14 = vld [vmem:[#allocation2 + $0xb4] sm:$0xf0]  ;;  %v3180_v16 = vor.u32 %v2843_v7, %v2369_v8  ;;  %v2825_v17 = vld [vmem:[#allocation2 + $0x34] sm:$0xf]  ;;  %v2297_v18 = vld [vmem:[#allocation2 + $0x38] sm:$0xf0]  ;;  %v3186_v21 = vor.u32 %v2826_v12, %v2295_v11 }
  0x1d   : > { %2259 = vmatmul.msk.bf16.vlgmr.msra.gmra.mxu2 %vm411_vm0, %v2817_v23  ;;  %2260 = vmatmul.msk.bf16.vlgmr.msra.gmra.mxu3 %vm411_vm0, %v2817_v23  ;;  %v3188_v22 = vor.u32 %v2842_v14, %v2359_v13  ;;  %v2824_v26 = vld [vmem:[#allocation2 + $0x24] sm:$0xf0]  ;;  %v2351_v27 = vld [vmem:[#allocation2 + $0xa0] sm:$0xf]  ;;  %v2823_v30 = vld [vmem:[#allocation2 + $0x24] sm:$0xf] }
  0x1e   : > { %528 = vmatpush.bf16.msrb.mxu2 %v400_v24  ;;  %542 = vmatpush.bf16.msrb.mxu3 %v401_v25  ;;  %v2287_v25 = vld [vmem:[#allocation2 + $0x20] sm:$0xf]  ;;  %v2840_v29 = vld [vmem:[#allocation2 + $0xa4] sm:$0xf0]  ;;  %v2289_v31 = vld [vmem:[#allocation2 + $0x28] sm:$0xf0] }
  0x1f   : > { %2257 = vmatmul.msk.bf16.vlgmr.msra.gmra.mxu0 %vm411_vm0, %v2817_v23  ;;  %2258 = vmatmul.msk.bf16.vlgmr.msra.gmra.mxu1 %vm411_vm0, %v2817_v23  ;;  %v3194_v23 = vor.u32 %v2825_v17, %v2297_v18  ;;  %v3202_v28 = vor.u32 %v2824_v26, %v2287_v25  ;;  %v3204_v32 = vor.u32 %v2840_v29, %v2351_v27  ;;  %v2839_v34 = vld [vmem:[#allocation2 + $0xa4] sm:$0xf]  ;;  %v2353_v35 = vld [vmem:[#allocation2 + $0xa8] sm:$0xf0]  ;;  %v2279_v39 = vld [vmem:[#allocation2 + $0x10] sm:$0xf] }
  0x20   : > { %496 = vmatpush.bf16.msrb.mxu0 %v449_v19  ;;  %510 = vmatpush.bf16.msrb.mxu1 %v450_v20  ;;  %v2841_v19 = vld [vmem:[#allocation2 + $0xb4] sm:$0xf]  ;;  %v2361_v20 = vld [vmem:[#allocation2 + $0xb8] sm:$0xf0]  ;;  %v3206_v33 = vor.u32 %v2823_v30, %v2289_v31  ;;  %v3209_v38 = vor.u32 %v2839_v34, %v2353_v35  ;;  %v2822_v42 = vld [vmem:[#allocation2 + $0x14] sm:$0xf0] }
  0x21   : > { %v3196_v24 = vor.u32 %v2841_v19, %v2361_v20  ;;  %v2343_v43 = vld [vmem:[#allocation2 + $0x90] sm:$0xf]  ;;  %v2280_v44 = vor.u32 %v2822_v42, %v2279_v39  ;;  %v2838_v45 = vld [vmem:[#allocation2 + $0x94] sm:$0xf0]  ;;  %v2821_v46 = vld [vmem:[#allocation2 + $0x14] sm:$0xf] }
  0x22   : > { %794 = vmatpush.bf16.msra.mxu2 %v3139_v40  ;;  %807 = vmatpush.bf16.msra.mxu3 %v3141_v41  ;;  %v2281_v47 = vld [vmem:[#allocation2 + $0x18] sm:$0xf0]  ;;  %v2344_v50 = vor.u32 %v2838_v45, %v2343_v43  ;;  %v2837_v54 = vld [vmem:[#allocation2 + $0x94] sm:$0xf]  ;;  %v1507_v57 = vld [vmem:[%s3947_s5 + $0x4] sm:$0x3] }
  0x23   : > { %v2284_v51 = vor.u32 %v2821_v46, %v2281_v47  ;;  %v2345_v55 = vld [vmem:[#allocation2 + $0x98] sm:$0xf0]  ;;  %v2271_v58 = vld [vmem:[#allocation2] sm:$0xf]  ;;  %v2820_v59 = vld [vmem:[#allocation2 + $0x4] sm:$0xf0]  ;;  %1510 = vperm.xlu1 %2979, %v1507_v57  }
  0x24   : > { %768 = vmatpush.bf16.msra.mxu0 %v3133_v36  ;;  %781 = vmatpush.bf16.msra.mxu1 %v3135_v37  ;;  %v2348_v56 = vor.u32 %v2837_v54, %v2345_v55  ;;  %v2272_v62 = vor.u32 %v2820_v59, %v2271_v58  ;;  %v2335_v1 = vld [vmem:[#allocation2 + $0x80] sm:$0xf]  ;;  %v2836_v2 = vld [vmem:[#allocation2 + $0x84] sm:$0xf0]  ;;  %v2819_v3 = vld [vmem:[#allocation2 + $0x4] sm:$0xf] }
  0x25   : > { %v2273_v5 = vld [vmem:[#allocation2 + $0x8] sm:$0xf0]  ;;  %v2835_v6 = vld [vmem:[#allocation2 + $0x84] sm:$0xf]  ;;  %v879_v12 = vld [vmem:[%s3947_s5] sm:$0x3] }
  0x26   : > { %795 = vmatpush.bf16.msra.mxu2 %v3151_v52  ;;  %808 = vmatpush.bf16.msra.mxu3 %v3153_v53  ;;  %v2337_v7 = vld [vmem:[#allocation2 + $0x88] sm:$0xf0]  ;;  %v2276_v8 = vor.u32 %v2819_v3, %v2273_v5  ;;  %v2455_v43 = vld [vmem:[#allocation2 + $0x170] sm:$0xf]  ;;  %v2882_v46 = vld [vmem:[#allocation2 + $0x1f4] sm:$0xf0] }
  0x27   : > { %v2340_v11 = vor.u32 %v2835_v6, %v2337_v7  ;;  %v2519_v45 = vld [vmem:[#allocation2 + $0x1f0] sm:$0xf]  ;;  %v2865_v47 = vld [vmem:[#allocation2 + $0x174] sm:$0xf]  ;;  %v2863_v5 = vld [vmem:[#allocation2 + $0x164] sm:$0xf] }
  0x28   : > { %769 = vmatpush.bf16.msra.mxu0 %v3145_v48  ;;  %782 = vmatpush.bf16.msra.mxu1 %v3147_v49  ;;  %v2881_v55 = vld [vmem:[#allocation2 + $0x1f4] sm:$0xf]  ;;  %v3276_v58 = vor.u32 %v2882_v46, %v2519_v45  ;;  %v2449_v6 = vld [vmem:[#allocation2 + $0x168] sm:$0xf0]  ;;  %v2879_v7 = vld [vmem:[#allocation2 + $0x1e4] sm:$0xf] }
  0x29   : > { %s3038_s11 = smov 113   ;;  %s3039_s12 = smov 111   ;;  %v2415_v46 = vld [vmem:[#allocation2 + $0x120] sm:$0xf]  ;;  %vm1849_vm2 = vcmask 1043456   ;;  %vm1852_vm3 = vcmask 1045504  }
  0x2a   : > { %796 = vmatpush.bf16.msra.mxu2 %v3163_v63  ;;  %809 = vmatpush.bf16.msra.mxu3 %v3165_v0  ;;  %s3040_s14 = smov 112  }
  0x2b   : > { %882 = vperm.xlu1 %2979, %v879_v12  }
  0x2c   : > { %770 = vmatpush.bf16.msra.mxu0 %v3157_v60  ;;  %783 = vmatpush.bf16.msra.mxu1 %v3159_v61 }
  0x2d   : > { %2267 = vmatmul.msk.bf16.vlgmr.msrb.gmra.mxu2 %vm411_vm0, %v2818_v4  ;;  %2268 = vmatmul.msk.bf16.vlgmr.msrb.gmra.mxu3 %vm411_vm0, %v2818_v4 }
  0x2e   : > { %797 = vmatpush.bf16.msra.mxu2 %v3178_v15  ;;  %810 = vmatpush.bf16.msra.mxu3 %v3180_v16 }
  0x2f   : > { %2265 = vmatmul.msk.bf16.vlgmr.msrb.gmra.mxu0 %vm411_vm0, %v2818_v4  ;;  %2266 = vmatmul.msk.bf16.vlgmr.msrb.gmra.mxu1 %vm411_vm0, %v2818_v4  ;;  %v2336_v4 = vor.u32 %v2836_v2, %v2335_v1  ;;  %v2864_v1 = vld [vmem:[#allocation2 + $0x164] sm:$0xf0]  ;;  %v2511_v2 = vld [vmem:[#allocation2 + $0x1e0] sm:$0xf] }
  0x30   : > { %771 = vmatpush.bf16.msra.mxu0 %v3172_v9  ;;  %784 = vmatpush.bf16.msra.mxu1 %v3174_v10 }
  0x32   : > { %798 = vmatpush.bf16.msra.mxu2 %v3194_v23  ;;  %811 = vmatpush.bf16.msra.mxu3 %v3196_v24 }
  0x34   : > { %772 = vmatpush.bf16.msra.mxu0 %v3186_v21  ;;  %785 = vmatpush.bf16.msra.mxu1 %v3188_v22 }
  0x36   : > { %799 = vmatpush.bf16.msra.mxu2 %v3206_v33  ;;  %812 = vmatpush.bf16.msra.mxu3 %v3209_v38 }
  0x38   : > { %773 = vmatpush.bf16.msra.mxu0 %v3202_v28  ;;  %786 = vmatpush.bf16.msra.mxu1 %v3204_v32 }
  0x3a   : > { %800 = vmatpush.bf16.msra.mxu2 %v2284_v51  ;;  %813 = vmatpush.bf16.msra.mxu3 %v2348_v56 }
  0x3c   : > { %774 = vmatpush.bf16.msra.mxu0 %v2280_v44  ;;  %787 = vmatpush.bf16.msra.mxu1 %v2344_v50 }
  0x3e   : > { %801 = vmatpush.bf16.msra.mxu2 %v2276_v8  ;;  %814 = vmatpush.bf16.msra.mxu3 %v2340_v11 }
  0x40   : > { %775 = vmatpush.bf16.msra.mxu0 %v2272_v62  ;;  %788 = vmatpush.bf16.msra.mxu1 %v2336_v4 }
  0x42   : > { %853 = vmatpush.bf16.msrb.mxu2 %v3139_v40  ;;  %866 = vmatpush.bf16.msrb.mxu3 %v3141_v41 }
  0x44   : > { %827 = vmatpush.bf16.msrb.mxu0 %v3133_v36  ;;  %840 = vmatpush.bf16.msrb.mxu1 %v3135_v37 }
  0x46   : > { %854 = vmatpush.bf16.msrb.mxu2 %v3151_v52  ;;  %867 = vmatpush.bf16.msrb.mxu3 %v3153_v53 }
  0x48   : > { %828 = vmatpush.bf16.msrb.mxu0 %v3145_v48  ;;  %841 = vmatpush.bf16.msrb.mxu1 %v3147_v49 }
  0x4a   : > { %855 = vmatpush.bf16.msrb.mxu2 %v3163_v63  ;;  %868 = vmatpush.bf16.msrb.mxu3 %v3165_v0 }
  0x4c   : > { %829 = vmatpush.bf16.msrb.mxu0 %v3157_v60  ;;  %842 = vmatpush.bf16.msrb.mxu1 %v3159_v61 }
  0x4e   : > { %856 = vmatpush.bf16.msrb.mxu2 %v3178_v15  ;;  %869 = vmatpush.bf16.msrb.mxu3 %v3180_v16 }
  0x50   : > { %830 = vmatpush.bf16.msrb.mxu0 %v3172_v9  ;;  %843 = vmatpush.bf16.msrb.mxu1 %v3174_v10 }
  0x52   : > { %857 = vmatpush.bf16.msrb.mxu2 %v3194_v23  ;;  %870 = vmatpush.bf16.msrb.mxu3 %v3196_v24 }
  0x54   : > { %831 = vmatpush.bf16.msrb.mxu0 %v3186_v21  ;;  %844 = vmatpush.bf16.msrb.mxu1 %v3188_v22 }
  0x56   : > { %858 = vmatpush.bf16.msrb.mxu2 %v3206_v33  ;;  %871 = vmatpush.bf16.msrb.mxu3 %v3209_v38 }
  0x58   : > { %832 = vmatpush.bf16.msrb.mxu0 %v3202_v28  ;;  %845 = vmatpush.bf16.msrb.mxu1 %v3204_v32 }
  0x5a   : > { %859 = vmatpush.bf16.msrb.mxu2 %v2284_v51  ;;  %872 = vmatpush.bf16.msrb.mxu3 %v2348_v56  ;;  %v2521_v56 = vld [vmem:[#allocation2 + $0x1f8] sm:$0xf0] }
  0x5b   : > { %v3283_v3 = vor.u32 %v2881_v55, %v2521_v56  ;;  %v2479_v56 = vld [vmem:[#allocation2 + $0x1a0] sm:$0xf] }
  0x5c   : > { %833 = vmatpush.bf16.msrb.mxu0 %v2280_v44  ;;  %846 = vmatpush.bf16.msrb.mxu1 %v2344_v50  ;;  %v2866_v44 = vld [vmem:[#allocation2 + $0x174] sm:$0xf0]  ;;  %v2457_v50 = vld [vmem:[#allocation2 + $0x178] sm:$0xf0] }
  0x5d   : > { %v3270_v57 = vor.u32 %v2866_v44, %v2455_v43  ;;  %v3278_v59 = vor.u32 %v2865_v47, %v2457_v50  ;;  %v2856_v47 = vld [vmem:[#allocation2 + $0x124] sm:$0xf0] }
  0x5e   : > { %860 = vmatpush.bf16.msrb.mxu2 %v2276_v8  ;;  %873 = vmatpush.bf16.msrb.mxu3 %v2340_v11  ;;  %v2513_v8 = vld [vmem:[#allocation2 + $0x1e8] sm:$0xf0] }
  0x60   : > { %834 = vmatpush.bf16.msrb.mxu0 %v2272_v62  ;;  %847 = vmatpush.bf16.msrb.mxu1 %v2336_v4  ;;  %v2447_v62 = vld [vmem:[#allocation2 + $0x160] sm:$0xf]  ;;  %v2880_v4 = vld [vmem:[#allocation2 + $0x1e4] sm:$0xf0] }
  0x61   : > { %v3289_v11 = vor.u32 %v2864_v1, %v2447_v62  ;;  %v3293_v12 = vor.u32 %v2880_v4, %v2511_v2  ;;  %v2872_v62 = vld [vmem:[#allocation2 + $0x1a4] sm:$0xf0]  ;;  %v2855_v1 = vld [vmem:[#allocation2 + $0x124] sm:$0xf]  ;;  %v2417_v2 = vld [vmem:[#allocation2 + $0x128] sm:$0xf0] }
  0x62   : > { %v2871_v4 = vld [vmem:[#allocation2 + $0x1a4] sm:$0xf] }
  0x69   : > { %v3244_v52 = vpop.permute.xlu2 %1823 }
  0x71   : > { %v558_v14 = vpop.permute.xlu2 %557 }
  0x80   : > { %v563_v31 = vpop.permute.xlu0 %562 }
  0x9c   : > { %v424_v36 = vpop.f32.mrf.mxu0  ;;  %v438_v37 = vpop.f32.mrf.mxu1 }
  0xa0   : > { %v462_v40 = vpop.f32.mrf.mxu2  ;;  %v476_v41 = vpop.f32.mrf.mxu3 }
  0xa1   : > { %v463_v0 = vadd.f32 %v462_v40, %v424_v36  ;;  %v477_v9 = vadd.f32 %v476_v41, %v438_v37  ;;  %v3295_v36 = vor.u32 %v2863_v5, %v2449_v6  ;;  %v2439_v37 = vld [vmem:[#allocation2 + $0x150] sm:$0xf]  ;;  %v2862_v40 = vld [vmem:[#allocation2 + $0x154] sm:$0xf0]  ;;  %v2481_v5 = vld [vmem:[#allocation2 + $0x1a8] sm:$0xf0]  ;;  %v3360_v6 = vor.u32 %v2856_v47, %v2415_v46 }
  0xa2   : > { %v2503_v41 = vld [vmem:[#allocation2 + $0x1d0] sm:$0xf]  ;;  %v2911_v47 = vld [vmem:[#allocation2 + $0x2e4] sm:$0xf] }
  0xa4   : > { %v426_v48 = vpop.f32.mrf.mxu0  ;;  %v440_v49 = vpop.f32.mrf.mxu1 }
  0xa8   : > { %v464_v53 = vpop.f32.mrf.mxu2  ;;  %v478_v60 = vpop.f32.mrf.mxu3 }
  0xa9   : > { %v465_v23 = vadd.f32 %v464_v53, %v426_v48  ;;  %v479_v24 = vadd.f32 %v478_v60, %v440_v49  ;;  %v3298_v48 = vor.u32 %v2879_v7, %v2513_v8  ;;  %v2878_v49 = vld [vmem:[#allocation2 + $0x1d4] sm:$0xf0]  ;;  %v2861_v53 = vld [vmem:[#allocation2 + $0x154] sm:$0xf]  ;;  %v2441_v60 = vld [vmem:[#allocation2 + $0x158] sm:$0xf0]  ;;  %v3362_v7 = vor.u32 %v2872_v62, %v2479_v56 }
  0xaa   : > { %v2407_v8 = vld [vmem:[#allocation2 + $0x110] sm:$0xf] }
  0xac   : > { %v498_v61 = vpop.f32.mrf.mxu0  ;;  %v512_v63 = vpop.f32.mrf.mxu1 }
  0xad   : > { %v517_v10 = vadd.f32 %v498_v61, %v463_v0  ;;  %v518_v13 = vadd.f32 %v512_v63, %v477_v9  ;;  %v2877_v61 = vld [vmem:[#allocation2 + $0x1d4] sm:$0xf]  ;;  %v2505_v63 = vld [vmem:[#allocation2 + $0x1d8] sm:$0xf0]  ;;  %v3301_v0 = vor.u32 %v2862_v40, %v2439_v37  ;;  %v3305_v9 = vor.u32 %v2878_v49, %v2503_v41  ;;  %v2854_v37 = vld [vmem:[#allocation2 + $0x114] sm:$0xf0] }
  0xae   : > { %v3366_v40 = vor.u32 %v2855_v1, %v2417_v2  ;;  %v3368_v41 = vor.u32 %v2871_v4, %v2481_v5  ;;  %v2471_v49 = vld [vmem:[#allocation2 + $0x190] sm:$0xf]  ;;  %v2894_v4 = vld [vmem:[#allocation2 + $0x254] sm:$0xf0] }
  0xaf   : > { %v2567_v2 = vld [vmem:[#allocation2 + $0x250] sm:$0xf] }
  0xb0   : > { %v530_v15 = vpop.f32.mrf.mxu2  ;;  %v544_v16 = vpop.f32.mrf.mxu3 }
  0xb1   : > { %v549_v17 = vadd.f32 %v530_v15, %v517_v10  ;;  %v550_v18 = vadd.f32 %v544_v16, %v518_v13  ;;  %v3307_v10 = vor.u32 %v2861_v53, %v2441_v60  ;;  %v2431_v13 = vld [vmem:[#allocation2 + $0x140] sm:$0xf]  ;;  %v3312_v16 = vor.u32 %v2877_v61, %v2505_v63  ;;  %v2870_v53 = vld [vmem:[#allocation2 + $0x194] sm:$0xf0]  ;;  %v2853_v60 = vld [vmem:[#allocation2 + $0x114] sm:$0xf] }
  0xb2   : > { %v2495_v15 = vld [vmem:[#allocation2 + $0x1c0] sm:$0xf]  ;;  %v2409_v61 = vld [vmem:[#allocation2 + $0x118] sm:$0xf0]  ;;  %v2869_v63 = vld [vmem:[#allocation2 + $0x194] sm:$0xf] }
  0xb3   : > { %v3246_v19 = vadd.f32 %v558_v14, %v549_v17  ;;  %v3248_v20 = vadd.f32 %v558_v14, %v550_v18  ;;  %v2860_v14 = vld [vmem:[#allocation2 + $0x144] sm:$0xf0]  ;;  %v2859_v18 = vld [vmem:[#allocation2 + $0x144] sm:$0xf] }
  0xb4   : > { %v500_v21 = vpop.f32.mrf.mxu0  ;;  %v514_v22 = vpop.f32.mrf.mxu1  ;;  %v2876_v17 = vld [vmem:[#allocation2 + $0x1c4] sm:$0xf0] }
  0xb5   : > { %1895 = vrot.lane.b32.xlu2 %v3248_v20, %s3033_s26  ;;  %1868 = vrot.lane.b32.xlu1 %v3248_v20, %s3034_s27  ;;  %v519_v25 = vadd.f32 %v500_v21, %v465_v23  ;;  %v520_v26 = vadd.f32 %v514_v22, %v479_v24  ;;  %v2433_v21 = vld [vmem:[#allocation2 + $0x148] sm:$0xf0]  ;;  %v2875_v22 = vld [vmem:[#allocation2 + $0x1c4] sm:$0xf]  ;;  %v3319_v24 = vor.u32 %v2860_v14, %v2431_v13  ;;  %v2473_v13 = vld [vmem:[#allocation2 + $0x198] sm:$0xf0] }
  0xb6   : > { %1864 = vrot.lane.b32.xlu0 %v3246_v19, %s3034_s27  ;;  %v2497_v23 = vld [vmem:[#allocation2 + $0x1c8] sm:$0xf0]  ;;  %v2408_v14 = vor.u32 %v2854_v37, %v2407_v8  ;;  %v2910_v8 = vld [vmem:[#allocation2 + $0x2d4] sm:$0xf0]  ;;  %v2893_v37 = vld [vmem:[#allocation2 + $0x254] sm:$0xf] }
  0xb8   : > { %v532_v27 = vpop.f32.mrf.mxu2  ;;  %v546_v28 = vpop.f32.mrf.mxu3 }
  0xb9   : > { %v551_v29 = vadd.f32 %v532_v27, %v519_v25  ;;  %v552_v30 = vadd.f32 %v546_v28, %v520_v26  ;;  %v3323_v25 = vor.u32 %v2876_v17, %v2495_v15  ;;  %v3325_v26 = vor.u32 %v2859_v18, %v2433_v21  ;;  %v2399_v17 = vld [vmem:[#allocation2 + $0x100] sm:$0xf]  ;;  %v2852_v18 = vld [vmem:[#allocation2 + $0x104] sm:$0xf0] }
  0xba   : > { %v3328_v27 = vor.u32 %v2875_v22, %v2497_v23  ;;  %v2472_v15 = vor.u32 %v2870_v53, %v2471_v49  ;;  %v2412_v21 = vor.u32 %v2853_v60, %v2409_v61  ;;  %v2476_v22 = vor.u32 %v2869_v63, %v2473_v13  ;;  %v2463_v23 = vld [vmem:[#allocation2 + $0x180] sm:$0xf]  ;;  %v2633_v49 = vld [vmem:[#allocation2 + $0x2d8] sm:$0xf0]  ;;  %v2892_v63 = vld [vmem:[#allocation2 + $0x244] sm:$0xf0] }
  0xbb   : > { %v567_v32 = vadd.f32 %v563_v31, %v551_v29  ;;  %v568_v33 = vadd.f32 %v563_v31, %v552_v30  ;;  %v2423_v30 = vld [vmem:[#allocation2 + $0x130] sm:$0xf]  ;;  %v2858_v31 = vld [vmem:[#allocation2 + $0x134] sm:$0xf0]  ;;  %v3426_v53 = vor.u32 %v2894_v4, %v2567_v2  ;;  %v2559_v61 = vld [vmem:[#allocation2 + $0x240] sm:$0xf] }
  0xbc   : > { %v3335_v43 = vor.u32 %v2858_v31, %v2423_v30  ;;  %v2401_v30 = vld [vmem:[#allocation2 + $0x108] sm:$0xf0]  ;;  %v2867_v31 = vld [vmem:[#allocation2 + $0x184] sm:$0xf]  ;;  %v2599_v4 = vld [vmem:[#allocation2 + $0x290] sm:$0xf] }
  0xbd   : > { %v3256_v34 = vpack.c.bf16 %v568_v33, %v567_v32  ;;  %1917 = vrot.lane.b32.xlu2 %v3246_v19, %s3035_s28  ;;  %1891 = vrot.lane.b32.xlu1 %v3246_v19, %s3033_s26 }
  0xbe   : > { %1921 = vrot.lane.b32.xlu0 %v3248_v20, %s3035_s28 }
  0xbf   : > { %v570_v35 = vunpack.c.l.bf16 %v3256_v34  ;;  %v571_v38 = vunpack.c.h.bf16 %v3256_v34  ;;  %v821_v28 = vunpack.c.l.b16 %v3256_v34  ;;  %v822_v29 = vunpack.c.h.b16 %v3256_v34 }
  0xc1   : > { %v573_v39 = vsub.f32 %v568_v33, %v571_v38  ;;  %v572_v42 = vsub.f32 %v567_v32, %v570_v35  ;;  %v2487_v32 = vld [vmem:[#allocation2 + $0x1b0] sm:$0xf]  ;;  %v2874_v33 = vld [vmem:[#allocation2 + $0x1b4] sm:$0xf0]  ;;  %v2857_v35 = vld [vmem:[#allocation2 + $0x134] sm:$0xf]  ;;  %v3340_v34 = vpack.c.b16 %v821_v28, %v821_v28  ;;  %v3342_v44 = vpack.c.b16 %v822_v29, %v822_v29 }
  0xc2   : > { %v2425_v38 = vld [vmem:[#allocation2 + $0x138] sm:$0xf0]  ;;  %v3344_v45 = vor.u32 %v2874_v33, %v2487_v32  ;;  %v2868_v28 = vld [vmem:[#allocation2 + $0x184] sm:$0xf0]  ;;  %v2851_v29 = vld [vmem:[#allocation2 + $0x104] sm:$0xf]  ;;  %v2400_v33 = vor.u32 %v2852_v18, %v2399_v17 }
  0xc3   : > { %v3266_v51 = vpack.c.bf16 %v573_v39, %v573_v39  ;;  %v3268_v54 = vpack.c.bf16 %v572_v42, %v572_v42  ;;  %v2873_v39 = vld [vmem:[#allocation2 + $0x1b4] sm:$0xf]  ;;  %v2489_v42 = vld [vmem:[#allocation2 + $0x1b8] sm:$0xf0]  ;;  %v3350_v50 = vor.u32 %v2857_v35, %v2425_v38  ;;  %v2465_v32 = vld [vmem:[#allocation2 + $0x188] sm:$0xf0]  ;;  %v2464_v35 = vor.u32 %v2868_v28, %v2463_v23 }
  0xc4   : > { %v3352_v55 = vor.u32 %v2873_v39, %v2489_v42  ;;  %v2404_v38 = vor.u32 %v2851_v29, %v2401_v30  ;;  %v2468_v39 = vor.u32 %v2867_v31, %v2465_v32  ;;  %v1139_v56 = vrot.slane %v3342_v44, 1  ;;  %v2908_v17 = vld [vmem:[#allocation2 + $0x2c4] sm:$0xf0]  ;;  %v2891_v18 = vld [vmem:[#allocation2 + $0x244] sm:$0xf] }
  0xc5   : > { %1973 = vrot.lane.b32.xlu2 %v3248_v20, %s3036_s29  ;;  %1947 = vrot.lane.b32.xlu1 %v3248_v20, %s3037_s30  ;;  %v922_v42 = vrot.slane %v3268_v54, 1  ;;  %v923_v46 = vrot.slane %v3266_v51, 1  ;;  %v2625_v23 = vld [vmem:[#allocation2 + $0x2c8] sm:$0xf0]  ;;  %v3438_v28 = vor.u32 %v2892_v63, %v2559_v61  ;;  %v2551_v30 = vld [vmem:[#allocation2 + $0x230] sm:$0xf] }
  0xc6   : > { %1943 = vrot.lane.b32.xlu0 %v3246_v19, %s3037_s30  ;;  %776 = vmatmul.bf16.vlgmr.msra.gmra.mxu0 %v3268_v54  ;;  %v2890_v31 = vld [vmem:[#allocation2 + $0x234] sm:$0xf0]  ;;  %v2527_v63 = vld [vmem:[#allocation2 + $0x200] sm:$0xf] }
  0xc7   : > { %789 = vmatmul.bf16.vlgmr.msra.gmra.mxu1 %v3266_v51  ;;  %802 = vmatmul.bf16.vlgmr.msra.gmra.mxu2 %v3268_v54 }
  0xc8   : > { %815 = vmatmul.bf16.vlgmr.msra.gmra.mxu3 %v3266_v51  ;;  %1086 = vmatpush.bf16.msra.mxu0 %v3270_v57 }
  0xc9   : > { %1099 = vmatpush.bf16.msra.mxu1 %v3276_v58  ;;  %1112 = vmatpush.bf16.msra.mxu2 %v3278_v59 }
  0xca   : > { %1125 = vmatpush.bf16.msra.mxu3 %v3283_v3 }
  0xcc   : > { %1087 = vmatpush.bf16.msra.mxu0 %v3289_v11 }
  0xcd   : > { %1100 = vmatpush.bf16.msra.mxu1 %v3293_v12  ;;  %1113 = vmatpush.bf16.msra.mxu2 %v3295_v36 }
  0xce   : > { %1126 = vmatpush.bf16.msra.mxu3 %v3298_v48  ;;  %1995 = vrot.lane.b32.xlu2 %v3246_v19, %s3038_s11 }
  0xcf   : > { %1969 = vrot.lane.b32.xlu1 %v3246_v19, %s3036_s29  ;;  %1999 = vrot.lane.b32.xlu0 %v3248_v20, %s3038_s11 }
  0xd0   : > { %1088 = vmatpush.bf16.msra.mxu0 %v3301_v0 }
  0xd1   : > { %1101 = vmatpush.bf16.msra.mxu1 %v3305_v9  ;;  %1114 = vmatpush.bf16.msra.mxu2 %v3307_v10 }
  0xd2   : > { %1127 = vmatpush.bf16.msra.mxu3 %v3312_v16 }
  0xd4   : > { %1089 = vmatpush.bf16.msra.mxu0 %v3319_v24 }
  0xd5   : > { %1102 = vmatpush.bf16.msra.mxu1 %v3323_v25  ;;  %1115 = vmatpush.bf16.msra.mxu2 %v3325_v26 }
  0xd6   : > { %1128 = vmatpush.bf16.msra.mxu3 %v3328_v27  ;;  %2051 = vrot.lane.b32.xlu2 %v3248_v20, %s3039_s12 }
  0xd7   : > { %2025 = vrot.lane.b32.xlu1 %v3248_v20, %s3040_s14  ;;  %2021 = vrot.lane.b32.xlu0 %v3246_v19, %s3040_s14 }
  0xd8   : > { %835 = vmatmul.bf16.vlgmr.msrb.gmra.mxu0 %v3340_v34  ;;  %848 = vmatmul.bf16.vlgmr.msrb.gmra.mxu1 %v3342_v44 }
  0xd9   : > { %861 = vmatmul.bf16.vlgmr.msrb.gmra.mxu2 %v3340_v34  ;;  %874 = vmatmul.bf16.vlgmr.msrb.gmra.mxu3 %v3342_v44 }
  0xda   : > { %1090 = vmatpush.bf16.msra.mxu0 %v3335_v43  ;;  %1103 = vmatpush.bf16.msra.mxu1 %v3344_v45 }
  0xdb   : > { %1116 = vmatpush.bf16.msra.mxu2 %v3350_v50  ;;  %1129 = vmatpush.bf16.msra.mxu3 %v3352_v55 }
  0xde   : > { %1091 = vmatpush.bf16.msra.mxu0 %v3360_v6  ;;  %1104 = vmatpush.bf16.msra.mxu1 %v3362_v7 }
  0xdf   : > { %1117 = vmatpush.bf16.msra.mxu2 %v3366_v40  ;;  %1130 = vmatpush.bf16.msra.mxu3 %v3368_v41 }
  0xe0   : > { %2047 = vrot.lane.b32.xlu1 %v3246_v19, %s3039_s12 }
  0xe2   : > { %1092 = vmatpush.bf16.msra.mxu0 %v2408_v14  ;;  %1105 = vmatpush.bf16.msra.mxu1 %v2472_v15 }
  0xe3   : > { %1118 = vmatpush.bf16.msra.mxu2 %v2412_v21  ;;  %1131 = vmatpush.bf16.msra.mxu3 %v2476_v22 }
  0xe6   : > { %1093 = vmatpush.bf16.msra.mxu0 %v2400_v33  ;;  %1106 = vmatpush.bf16.msra.mxu1 %v2464_v35 }
  0xe7   : > { %1119 = vmatpush.bf16.msra.mxu2 %v2404_v38  ;;  %1132 = vmatpush.bf16.msra.mxu3 %v2468_v39 }
  0xe9   : > { %1094 = vmatmul.bf16.vlgmr.msra.gmra.mxu0 %v922_v42  ;;  %1107 = vmatmul.bf16.vlgmr.msra.gmra.mxu1 %v923_v46 }
  0xea   : > { %1142 = vmatpush.bf16.msrb.mxu0 %v3270_v57  ;;  %1155 = vmatpush.bf16.msrb.mxu1 %v3276_v58  ;;  %v2583_v57 = vld [vmem:[#allocation2 + $0x270] sm:$0xf]  ;;  %v2898_v58 = vld [vmem:[#allocation2 + $0x274] sm:$0xf0] }
  0xeb   : > { %1168 = vmatpush.bf16.msrb.mxu2 %v3278_v59  ;;  %1181 = vmatpush.bf16.msrb.mxu3 %v3283_v3  ;;  %v2647_v59 = vld [vmem:[#allocation2 + $0x2f0] sm:$0xf]  ;;  %v2914_v3 = vld [vmem:[#allocation2 + $0x2f4] sm:$0xf0] }
  0xec   : > { %1120 = vmatmul.bf16.vlgmr.msra.gmra.mxu2 %v922_v42  ;;  %1133 = vmatmul.bf16.vlgmr.msra.gmra.mxu3 %v923_v46  ;;  %v2553_v42 = vld [vmem:[#allocation2 + $0x238] sm:$0xf0]  ;;  %v2905_v46 = vld [vmem:[#allocation2 + $0x2b4] sm:$0xf] }
  0xee   : > { %1143 = vmatpush.bf16.msrb.mxu0 %v3289_v11  ;;  %1156 = vmatpush.bf16.msrb.mxu1 %v3293_v12  ;;  %v2897_v11 = vld [vmem:[#allocation2 + $0x274] sm:$0xf]  ;;  %v2585_v12 = vld [vmem:[#allocation2 + $0x278] sm:$0xf0] }
  0xef   : > { %1169 = vmatpush.bf16.msrb.mxu2 %v3295_v36  ;;  %1182 = vmatpush.bf16.msrb.mxu3 %v3298_v48  ;;  %v2913_v36 = vld [vmem:[#allocation2 + $0x2f4] sm:$0xf]  ;;  %v2649_v48 = vld [vmem:[#allocation2 + $0x2f8] sm:$0xf0] }
  0xf2   : > { %1144 = vmatpush.bf16.msrb.mxu0 %v3301_v0  ;;  %1157 = vmatpush.bf16.msrb.mxu1 %v3305_v9  ;;  %v3402_v0 = vor.u32 %v2898_v58, %v2583_v57  ;;  %v3404_v9 = vor.u32 %v2914_v3, %v2647_v59  ;;  %v2617_v57 = vld [vmem:[#allocation2 + $0x2b8] sm:$0xf0]  ;;  %v3450_v58 = vor.u32 %v2890_v31, %v2551_v30  ;;  %v2543_v3 = vld [vmem:[#allocation2 + $0x220] sm:$0xf]  ;;  %v2529_v30 = vld [vmem:[#allocation2 + $0x208] sm:$0xf0] }
  0xf3   : > { %1170 = vmatpush.bf16.msrb.mxu2 %v3307_v10  ;;  %1183 = vmatpush.bf16.msrb.mxu3 %v3312_v16  ;;  %v2575_v10 = vld [vmem:[#allocation2 + $0x260] sm:$0xf]  ;;  %v2896_v16 = vld [vmem:[#allocation2 + $0x264] sm:$0xf0]  ;;  %v2899_v31 = vld [vmem:[#allocation2 + $0x284] sm:$0xf] }
  0xf4   : > { %v3414_v62 = vor.u32 %v2896_v16, %v2575_v10  ;;  %v2904_v10 = vld [vmem:[#allocation2 + $0x2a4] sm:$0xf0]  ;;  %v2887_v16 = vld [vmem:[#allocation2 + $0x224] sm:$0xf] }
  0xf6   : > { %1145 = vmatpush.bf16.msrb.mxu0 %v3319_v24  ;;  %1158 = vmatpush.bf16.msrb.mxu1 %v3323_v25  ;;  %v3406_v24 = vor.u32 %v2897_v11, %v2585_v12  ;;  %v3408_v25 = vor.u32 %v2913_v36, %v2649_v48  ;;  %v2888_v11 = vld [vmem:[#allocation2 + $0x224] sm:$0xf0]  ;;  %v3458_v36 = vor.u32 %v2905_v46, %v2617_v57  ;;  %v2607_v48 = vld [vmem:[#allocation2 + $0x2a0] sm:$0xf]  ;;  %v1235_v57 = vrot.slane %v3268_v54, 2 }
  0xf7   : > { %1171 = vmatpush.bf16.msrb.mxu2 %v3325_v26  ;;  %1184 = vmatpush.bf16.msrb.mxu3 %v3328_v27  ;;  %v2639_v26 = vld [vmem:[#allocation2 + $0x2e0] sm:$0xf]  ;;  %v2912_v27 = vld [vmem:[#allocation2 + $0x2e4] sm:$0xf0] }
  0xf8   : > { %v3416_v1 = vor.u32 %v2912_v27, %v2639_v26  ;;  %v2545_v26 = vld [vmem:[#allocation2 + $0x228] sm:$0xf0]  ;;  %v2903_v27 = vld [vmem:[#allocation2 + $0x2a4] sm:$0xf] }
  0xfa   : > { %1146 = vmatpush.bf16.msrb.mxu0 %v3335_v43  ;;  %1159 = vmatpush.bf16.msrb.mxu1 %v3344_v45  ;;  %v2895_v43 = vld [vmem:[#allocation2 + $0x264] sm:$0xf]  ;;  %v2577_v45 = vld [vmem:[#allocation2 + $0x268] sm:$0xf0] }
  0xfb   : > { %1172 = vmatpush.bf16.msrb.mxu2 %v3350_v50  ;;  %1185 = vmatpush.bf16.msrb.mxu3 %v3352_v55  ;;  %v2641_v50 = vld [vmem:[#allocation2 + $0x2e8] sm:$0xf0]  ;;  %v1138_v55 = vrot.slane %v3340_v34, 1  ;;  %v3420_v5 = vor.u32 %v2895_v43, %v2577_v45  ;;  %v3462_v45 = vor.u32 %v2888_v11, %v2543_v3  ;;  %v1236_v3 = vrot.slane %v3266_v51, 2  ;;  %v2943_v11 = vld [vmem:[#allocation2 + $0x3e4] sm:$0xf] }
  0xfc   : > { %v2609_v43 = vld [vmem:[#allocation2 + $0x2a8] sm:$0xf0] }
  0xfd   : > { %v3470_v2 = vor.u32 %v2903_v27, %v2609_v43  ;;  %v2926_v27 = vld [vmem:[#allocation2 + $0x354] sm:$0xf0] }
  0xfe   : > { %1147 = vmatpush.bf16.msrb.mxu0 %v3360_v6  ;;  %1160 = vmatpush.bf16.msrb.mxu1 %v3362_v7  ;;  %v3422_v6 = vor.u32 %v2911_v47, %v2641_v50  ;;  %v2631_v7 = vld [vmem:[#allocation2 + $0x2d0] sm:$0xf]  ;;  %v3464_v47 = vor.u32 %v2904_v10, %v2607_v48  ;;  %v1452_v48 = vrot.slane %v3342_v44, 2 }
  0xff   : > { %1173 = vmatpush.bf16.msrb.mxu2 %v3366_v40  ;;  %1186 = vmatpush.bf16.msrb.mxu3 %v3368_v41  ;;  %v2569_v40 = vld [vmem:[#allocation2 + $0x258] sm:$0xf0]  ;;  %v2909_v41 = vld [vmem:[#allocation2 + $0x2d4] sm:$0xf]  ;;  %v3428_v60 = vor.u32 %v2910_v8, %v2631_v7  ;;  %v2535_v50 = vld [vmem:[#allocation2 + $0x210] sm:$0xf] }
 0x100   : > { %v3432_v13 = vor.u32 %v2893_v37, %v2569_v40  ;;  %v2902_v7 = vld [vmem:[#allocation2 + $0x294] sm:$0xf0]  ;;  %v2885_v8 = vld [vmem:[#allocation2 + $0x214] sm:$0xf]  ;;  %v2537_v37 = vld [vmem:[#allocation2 + $0x218] sm:$0xf0] }
 0x101   : > { %v2901_v40 = vld [vmem:[#allocation2 + $0x294] sm:$0xf]  ;;  %v2600_v61 = vor.u32 %v2902_v7, %v2599_v4  ;;  %v2761_v7 = vld [vmem:[#allocation2 + $0x3d8] sm:$0xf0] }
 0x102   : > { %1148 = vmatpush.bf16.msrb.mxu0 %v2408_v14  ;;  %1161 = vmatpush.bf16.msrb.mxu1 %v2472_v15  ;;  %v3434_v14 = vor.u32 %v2909_v41, %v2633_v49  ;;  %v2623_v15 = vld [vmem:[#allocation2 + $0x2c0] sm:$0xf]  ;;  %v2601_v41 = vld [vmem:[#allocation2 + $0x298] sm:$0xf0]  ;;  %v2941_v4 = vld [vmem:[#allocation2 + $0x3d4] sm:$0xf] }
 0x103   : > { %1174 = vmatpush.bf16.msrb.mxu2 %v2412_v21  ;;  %1187 = vmatpush.bf16.msrb.mxu3 %v2476_v22  ;;  %v2561_v21 = vld [vmem:[#allocation2 + $0x248] sm:$0xf0]  ;;  %v2907_v22 = vld [vmem:[#allocation2 + $0x2c4] sm:$0xf]  ;;  %v3440_v29 = vor.u32 %v2908_v17, %v2623_v15  ;;  %v2884_v15 = vld [vmem:[#allocation2 + $0x204] sm:$0xf0]  ;;  %v2540_v17 = vor.u32 %v2885_v8, %v2537_v37 }
 0x104   : > { %v3444_v32 = vor.u32 %v2891_v18, %v2561_v21  ;;  %v2604_v18 = vor.u32 %v2901_v40, %v2601_v41  ;;  %v2591_v21 = vld [vmem:[#allocation2 + $0x280] sm:$0xf] }
 0x106   : > { %1149 = vmatpush.bf16.msrb.mxu0 %v2400_v33  ;;  %1162 = vmatpush.bf16.msrb.mxu1 %v2464_v35  ;;  %v3446_v33 = vor.u32 %v2907_v22, %v2625_v23  ;;  %v2615_v35 = vld [vmem:[#allocation2 + $0x2b0] sm:$0xf]  ;;  %v2900_v22 = vld [vmem:[#allocation2 + $0x284] sm:$0xf0]  ;;  %v2883_v23 = vld [vmem:[#allocation2 + $0x204] sm:$0xf] }
 0x107   : > { %1175 = vmatpush.bf16.msrb.mxu2 %v2404_v38  ;;  %1188 = vmatpush.bf16.msrb.mxu3 %v2468_v39  ;;  %v2906_v38 = vld [vmem:[#allocation2 + $0x2b4] sm:$0xf0]  ;;  %v2889_v39 = vld [vmem:[#allocation2 + $0x234] sm:$0xf] }
 0x108   : > { %v3452_v59 = vor.u32 %v2906_v38, %v2615_v35  ;;  %v3456_v12 = vor.u32 %v2889_v39, %v2553_v42  ;;  %v2593_v35 = vld [vmem:[#allocation2 + $0x288] sm:$0xf0]  ;;  %v2528_v38 = vor.u32 %v2884_v15, %v2527_v63  ;;  %v2592_v39 = vor.u32 %v2900_v22, %v2591_v21  ;;  %v2923_v21 = vld [vmem:[#allocation2 + $0x344] sm:$0xf] }
 0x109   : > { %1150 = vmatmul.bf16.vlgmr.msrb.gmra.mxu0 %v1138_v55  ;;  %1163 = vmatmul.bf16.vlgmr.msrb.gmra.mxu1 %v1139_v56  ;;  %v2532_v42 = vor.u32 %v2883_v23, %v2529_v30  ;;  %v2596_v46 = vor.u32 %v2899_v31, %v2593_v35  ;;  %v3536_v15 = vor.u32 %v2941_v4, %v2761_v7  ;;  %v2689_v22 = vld [vmem:[#allocation2 + $0x348] sm:$0xf0]  ;;  %v2939_v23 = vld [vmem:[#allocation2 + $0x3c4] sm:$0xf]  ;;  %v2918_v4 = vld [vmem:[#allocation2 + $0x314] sm:$0xf0] }
 0x10a   : > { %1399 = vmatpush.bf16.msra.mxu0 %v3402_v0  ;;  %1412 = vmatpush.bf16.msra.mxu1 %v3404_v9  ;;  %v2753_v30 = vld [vmem:[#allocation2 + $0x3c8] sm:$0xf0] }
 0x10b   : > { %1425 = vmatpush.bf16.msra.mxu2 %v3406_v24  ;;  %1438 = vmatpush.bf16.msra.mxu3 %v3408_v25 }
 0x10c   : > { %1176 = vmatmul.bf16.vlgmr.msrb.gmra.mxu2 %v1138_v55  ;;  %1189 = vmatmul.bf16.vlgmr.msrb.gmra.mxu3 %v1139_v56  ;;  %v2886_v55 = vld [vmem:[#allocation2 + $0x214] sm:$0xf0]  ;;  %v3468_v56 = vor.u32 %v2887_v16, %v2545_v26  ;;  %v2695_v26 = vld [vmem:[#allocation2 + $0x350] sm:$0xf] }
 0x10d   : > { %v2536_v49 = vor.u32 %v2886_v55, %v2535_v50  ;;  %v2942_v50 = vld [vmem:[#allocation2 + $0x3d4] sm:$0xf0]  ;;  %v2925_v55 = vld [vmem:[#allocation2 + $0x354] sm:$0xf]  ;;  %v3528_v40 = vor.u32 %v2926_v27, %v2695_v26  ;;  %v2673_v26 = vld [vmem:[#allocation2 + $0x328] sm:$0xf0] }
 0x10e   : > { %1400 = vmatpush.bf16.msra.mxu0 %v3414_v62  ;;  %1413 = vmatpush.bf16.msra.mxu1 %v3416_v1  ;;  %v2935_v27 = vld [vmem:[#allocation2 + $0x3a4] sm:$0xf] }
 0x10f   : > { %1426 = vmatpush.bf16.msra.mxu2 %v3420_v5  ;;  %1439 = vmatpush.bf16.msra.mxu3 %v3422_v6 }
 0x112   : > { %1401 = vmatpush.bf16.msra.mxu0 %v3426_v53  ;;  %1414 = vmatpush.bf16.msra.mxu1 %v3428_v60 }
 0x113   : > { %1427 = vmatpush.bf16.msra.mxu2 %v3432_v13  ;;  %1440 = vmatpush.bf16.msra.mxu3 %v3434_v14 }
 0x116   : > { %1402 = vmatpush.bf16.msra.mxu0 %v3438_v28  ;;  %1415 = vmatpush.bf16.msra.mxu1 %v3440_v29 }
 0x117   : > { %1428 = vmatpush.bf16.msra.mxu2 %v3444_v32  ;;  %1441 = vmatpush.bf16.msra.mxu3 %v3446_v33 }
 0x11a   : > { %1403 = vmatpush.bf16.msra.mxu0 %v3450_v58  ;;  %1416 = vmatpush.bf16.msra.mxu1 %v3452_v59 }
 0x11b   : > { %1429 = vmatpush.bf16.msra.mxu2 %v3456_v12  ;;  %1442 = vmatpush.bf16.msra.mxu3 %v3458_v36 }
 0x11e   : > { %1404 = vmatpush.bf16.msra.mxu0 %v3462_v45  ;;  %1417 = vmatpush.bf16.msra.mxu1 %v3464_v47 }
 0x11f   : > { %1430 = vmatpush.bf16.msra.mxu2 %v3468_v56  ;;  %1443 = vmatpush.bf16.msra.mxu3 %v3470_v2 }
 0x122   : > { %1405 = vmatpush.bf16.msra.mxu0 %v2536_v49  ;;  %1418 = vmatpush.bf16.msra.mxu1 %v2600_v61 }
 0x123   : > { %1431 = vmatpush.bf16.msra.mxu2 %v2540_v17  ;;  %1444 = vmatpush.bf16.msra.mxu3 %v2604_v18 }
 0x126   : > { %1406 = vmatpush.bf16.msra.mxu0 %v2528_v38  ;;  %1419 = vmatpush.bf16.msra.mxu1 %v2592_v39 }
 0x127   : > { %1432 = vmatpush.bf16.msra.mxu2 %v2532_v42  ;;  %1445 = vmatpush.bf16.msra.mxu3 %v2596_v46 }
 0x129   : > { %1407 = vmatmul.bf16.vlgmr.msra.gmra.mxu0 %v1235_v57  ;;  %1420 = vmatmul.bf16.vlgmr.msra.gmra.mxu1 %v1236_v3 }
 0x12a   : > { %1455 = vmatpush.bf16.msrb.mxu0 %v3402_v0  ;;  %1468 = vmatpush.bf16.msrb.mxu1 %v3404_v9  ;;  %v2711_v0 = vld [vmem:[#allocation2 + $0x370] sm:$0xf]  ;;  %v2930_v9 = vld [vmem:[#allocation2 + $0x374] sm:$0xf0] }
 0x12b   : > { %1481 = vmatpush.bf16.msrb.mxu2 %v3406_v24  ;;  %1494 = vmatpush.bf16.msrb.mxu3 %v3408_v25  ;;  %v2775_v24 = vld [vmem:[#allocation2 + $0x3f0] sm:$0xf]  ;;  %v2946_v25 = vld [vmem:[#allocation2 + $0x3f4] sm:$0xf0] }
 0x12c   : > { %1433 = vmatmul.bf16.vlgmr.msra.gmra.mxu2 %v1235_v57  ;;  %1446 = vmatmul.bf16.vlgmr.msra.gmra.mxu3 %v1236_v3  ;;  %v3548_v57 = vor.u32 %v2939_v23, %v2753_v30  ;;  %v2729_v23 = vld [vmem:[#allocation2 + $0x398] sm:$0xf0] }
 0x12e   : > { %1456 = vmatpush.bf16.msrb.mxu0 %v3414_v62  ;;  %1469 = vmatpush.bf16.msrb.mxu1 %v3416_v1  ;;  %v2929_v62 = vld [vmem:[#allocation2 + $0x374] sm:$0xf]  ;;  %v2713_v1 = vld [vmem:[#allocation2 + $0x378] sm:$0xf0] }
 0x12f   : > { %1482 = vmatpush.bf16.msrb.mxu2 %v3420_v5  ;;  %1495 = vmatpush.bf16.msrb.mxu3 %v3422_v6  ;;  %v2945_v5 = vld [vmem:[#allocation2 + $0x3f4] sm:$0xf]  ;;  %v2777_v6 = vld [vmem:[#allocation2 + $0x3f8] sm:$0xf0] }
 0x132   : > { %1457 = vmatpush.bf16.msrb.mxu0 %v3426_v53  ;;  %1470 = vmatpush.bf16.msrb.mxu1 %v3428_v60  ;;  %v3502_v53 = vor.u32 %v2930_v9, %v2711_v0  ;;  %v3504_v60 = vor.u32 %v2946_v25, %v2775_v24  ;;  %v2743_v0 = vld [vmem:[#allocation2 + $0x3b0] sm:$0xf]  ;;  %v2938_v9 = vld [vmem:[#allocation2 + $0x3b4] sm:$0xf0]  ;;  %v2921_v24 = vld [vmem:[#allocation2 + $0x334] sm:$0xf] }
 0x133   : > { %1483 = vmatpush.bf16.msrb.mxu2 %v3432_v13  ;;  %1496 = vmatpush.bf16.msrb.mxu3 %v3434_v14  ;;  %v2703_v13 = vld [vmem:[#allocation2 + $0x360] sm:$0xf]  ;;  %v2928_v14 = vld [vmem:[#allocation2 + $0x364] sm:$0xf0] }
 0x134   : > { %v3514_v10 = vor.u32 %v2928_v14, %v2703_v13 }
 0x136   : > { %1458 = vmatpush.bf16.msrb.mxu0 %v3438_v28  ;;  %1471 = vmatpush.bf16.msrb.mxu1 %v3440_v29  ;;  %v3506_v28 = vor.u32 %v2929_v62, %v2713_v1  ;;  %v3508_v29 = vor.u32 %v2945_v5, %v2777_v6  ;;  %v2681_v1 = vld [vmem:[#allocation2 + $0x338] sm:$0xf0]  ;;  %v2937_v5 = vld [vmem:[#allocation2 + $0x3b4] sm:$0xf] }
 0x137   : > { %1484 = vmatpush.bf16.msrb.mxu2 %v3444_v32  ;;  %1497 = vmatpush.bf16.msrb.mxu3 %v3446_v33  ;;  %v2767_v32 = vld [vmem:[#allocation2 + $0x3e0] sm:$0xf]  ;;  %v2944_v33 = vld [vmem:[#allocation2 + $0x3e4] sm:$0xf0]  ;;  %v2745_v6 = vld [vmem:[#allocation2 + $0x3b8] sm:$0xf0] }
 0x138   : > { %v3516_v16 = vor.u32 %v2944_v33, %v2767_v32  ;;  %v3556_v32 = vor.u32 %v2938_v9, %v2743_v0  ;;  %v2671_v33 = vld [vmem:[#allocation2 + $0x320] sm:$0xf]  ;;  %v2916_v9 = vld [vmem:[#allocation2 + $0x304] sm:$0xf0] }
 0x139   : > { %v2655_v0 = vld [vmem:[#allocation2 + $0x300] sm:$0xf] }
 0x13a   : > { %1459 = vmatpush.bf16.msrb.mxu0 %v3450_v58  ;;  %1472 = vmatpush.bf16.msrb.mxu1 %v3452_v59  ;;  %v2927_v58 = vld [vmem:[#allocation2 + $0x364] sm:$0xf]  ;;  %v2705_v59 = vld [vmem:[#allocation2 + $0x368] sm:$0xf0] }
 0x13b   : > { %1485 = vmatpush.bf16.msrb.mxu2 %v3456_v12  ;;  %1498 = vmatpush.bf16.msrb.mxu3 %v3458_v36  ;;  %v2769_v12 = vld [vmem:[#allocation2 + $0x3e8] sm:$0xf0]  ;;  %v1451_v36 = vrot.slane %v3340_v34, 2  ;;  %v3520_v43 = vor.u32 %v2927_v58, %v2705_v59  ;;  %v2920_v58 = vld [vmem:[#allocation2 + $0x324] sm:$0xf0]  ;;  %v3560_v59 = vor.u32 %v2921_v24, %v2681_v1 }
 0x13c   : > { %v2719_v1 = vld [vmem:[#allocation2 + $0x380] sm:$0xf] }
 0x13e   : > { %1460 = vmatpush.bf16.msrb.mxu0 %v3462_v45  ;;  %1473 = vmatpush.bf16.msrb.mxu1 %v3464_v47  ;;  %v3522_v45 = vor.u32 %v2943_v11, %v2769_v12  ;;  %v2759_v47 = vld [vmem:[#allocation2 + $0x3d0] sm:$0xf]  ;;  %v3562_v11 = vor.u32 %v2937_v5, %v2745_v6  ;;  %v2735_v12 = vld [vmem:[#allocation2 + $0x3a0] sm:$0xf]  ;;  %v2932_v5 = vld [vmem:[#allocation2 + $0x384] sm:$0xf0] }
 0x13f   : > { %1486 = vmatpush.bf16.msrb.mxu2 %v3468_v56  ;;  %1499 = vmatpush.bf16.msrb.mxu3 %v3470_v2  ;;  %v2697_v2 = vld [vmem:[#allocation2 + $0x358] sm:$0xf0]  ;;  %v3530_v41 = vor.u32 %v2942_v50, %v2759_v47  ;;  %v2737_v47 = vld [vmem:[#allocation2 + $0x3a8] sm:$0xf0]  ;;  %v3566_v50 = vor.u32 %v2920_v58, %v2671_v33  ;;  %v2915_v6 = vld [vmem:[#allocation2 + $0x304] sm:$0xf] }
 0x140   : > { %v3534_v63 = vor.u32 %v2925_v55, %v2697_v2  ;;  %v2663_v2 = vld [vmem:[#allocation2 + $0x310] sm:$0xf]  ;;  %v2657_v33 = vld [vmem:[#allocation2 + $0x308] sm:$0xf0]  ;;  %v2931_v58 = vld [vmem:[#allocation2 + $0x384] sm:$0xf] }
 0x142   : > { %1461 = vmatpush.bf16.msrb.mxu0 %v2536_v49  ;;  %1474 = vmatpush.bf16.msrb.mxu1 %v2600_v61  ;;  %v2687_v49 = vld [vmem:[#allocation2 + $0x340] sm:$0xf]  ;;  %v2924_v61 = vld [vmem:[#allocation2 + $0x344] sm:$0xf0] }
 0x143   : > { %1487 = vmatpush.bf16.msrb.mxu2 %v2540_v17  ;;  %1500 = vmatpush.bf16.msrb.mxu3 %v2604_v18  ;;  %v777_v56 = vpop.f32.mrf.mxu0  ;;  %v2751_v17 = vld [vmem:[#allocation2 + $0x3c0] sm:$0xf]  ;;  %v2940_v18 = vld [vmem:[#allocation2 + $0x3c4] sm:$0xf0]  ;;  %v3540_v31 = vor.u32 %v2924_v61, %v2687_v49  ;;  %v2727_v61 = vld [vmem:[#allocation2 + $0x390] sm:$0xf] }
 0x144   : > { %v790_v8 = vpop.f32.mrf.mxu1  ;;  %v3542_v35 = vor.u32 %v2940_v18, %v2751_v17  ;;  %v2934_v17 = vld [vmem:[#allocation2 + $0x394] sm:$0xf0]  ;;  %v2917_v18 = vld [vmem:[#allocation2 + $0x314] sm:$0xf] }
 0x145   : > { %v3524_v37 = vadd.f32 %v790_v8, %v777_v56  ;;  %v3574_v8 = vor.u32 %v2935_v27, %v2737_v47 }
 0x146   : > { %1462 = vmatpush.bf16.msrb.mxu0 %v2528_v38  ;;  %1475 = vmatpush.bf16.msrb.mxu1 %v2592_v39  ;;  %v2679_v39 = vld [vmem:[#allocation2 + $0x330] sm:$0xf] }
 0x147   : > { %1488 = vmatpush.bf16.msrb.mxu2 %v2532_v42  ;;  %1501 = vmatpush.bf16.msrb.mxu3 %v2596_v46  ;;  %v2922_v42 = vld [vmem:[#allocation2 + $0x334] sm:$0xf0]  ;;  %v3546_v46 = vor.u32 %v2923_v21, %v2689_v22  ;;  %v2665_v21 = vld [vmem:[#allocation2 + $0x318] sm:$0xf0]  ;;  %v2933_v22 = vld [vmem:[#allocation2 + $0x394] sm:$0xf] }
 0x148   : > { %v3554_v14 = vor.u32 %v2922_v42, %v2679_v39  ;;  %v3578_v39 = vor.u32 %v2918_v4, %v2663_v2  ;;  %v3580_v42 = vor.u32 %v2934_v17, %v2727_v61  ;;  %v3585_v24 = vor.u32 %v2917_v18, %v2665_v21 }
 0x149   : > { %1463 = vmatmul.bf16.vlgmr.msrb.gmra.mxu0 %v1451_v36  ;;  %1476 = vmatmul.bf16.vlgmr.msrb.gmra.mxu1 %v1452_v48  ;;  %v1548_v61 = vrot.slane %v3268_v54, 3  ;;  %v1549_v17 = vrot.slane %v3266_v51, 3 }
 0x14a   : > { %1712 = vmatpush.bf16.msra.mxu0 %v3502_v53  ;;  %1725 = vmatpush.bf16.msra.mxu1 %v3504_v60  ;;  %v803_v38 = vpop.f32.mrf.mxu2 }
 0x14b   : > { %1738 = vmatpush.bf16.msra.mxu2 %v3506_v28  ;;  %1751 = vmatpush.bf16.msra.mxu3 %v3508_v29  ;;  %v816_v3 = vpop.f32.mrf.mxu3  ;;  %v779_v25 = vpop.f32.mrf.mxu0 }
 0x14c   : > { %1489 = vmatmul.bf16.vlgmr.msrb.gmra.mxu2 %v1451_v36  ;;  %1502 = vmatmul.bf16.vlgmr.msrb.gmra.mxu3 %v1452_v48  ;;  %v3550_v62 = vadd.f32 %v816_v3, %v803_v38  ;;  %v792_v13 = vpop.f32.mrf.mxu1  ;;  %v2936_v36 = vld [vmem:[#allocation2 + $0x3a4] sm:$0xf0]  ;;  %v2919_v48 = vld [vmem:[#allocation2 + $0x324] sm:$0xf]  ;;  %v3587_v25 = vor.u32 %v2933_v22, %v2729_v23 }
 0x14d   : > { %v3568_v55 = vor.u32 %v2936_v36, %v2735_v12  ;;  %v3572_v7 = vor.u32 %v2919_v48, %v2673_v26  ;;  %v2721_v12 = vld [vmem:[#allocation2 + $0x388] sm:$0xf0]  ;;  %v2720_v36 = vor.u32 %v2932_v5, %v2719_v1  ;;  %v2660_v48 = vor.u32 %v2915_v6, %v2657_v33 }
 0x14e   : > { %1713 = vmatpush.bf16.msra.mxu0 %v3514_v10  ;;  %1726 = vmatpush.bf16.msra.mxu1 %v3516_v16  ;;  %v2724_v26 = vor.u32 %v2931_v58, %v2721_v12 }
 0x14f   : > { %1739 = vmatpush.bf16.msra.mxu2 %v3520_v43  ;;  %1752 = vmatpush.bf16.msra.mxu3 %v3522_v45 }
 0x152   : > { %1714 = vmatpush.bf16.msra.mxu0 %v3528_v40  ;;  %1727 = vmatpush.bf16.msra.mxu1 %v3530_v41  ;;  %v805_v56 = vpop.f32.mrf.mxu2 }
 0x153   : > { %1740 = vmatpush.bf16.msra.mxu2 %v3534_v63  ;;  %1753 = vmatpush.bf16.msra.mxu3 %v3536_v15  ;;  %v818_v49 = vpop.f32.mrf.mxu3 }
 0x155   : > { %v836_v30 = vpop.f32.mrf.mxu0  ;;  %v849_v38 = vpop.f32.mrf.mxu1 }
 0x156   : > { %1715 = vmatpush.bf16.msra.mxu0 %v3540_v31  ;;  %1728 = vmatpush.bf16.msra.mxu1 %v3542_v35  ;;  %v837_v3 = vadd.f32 %v836_v30, %v3524_v37  ;;  %v2656_v37 = vor.u32 %v2916_v9, %v2655_v0 }
 0x157   : > { %1741 = vmatpush.bf16.msra.mxu2 %v3546_v46  ;;  %1754 = vmatpush.bf16.msra.mxu3 %v3548_v57 }
 0x158   : > { %v3589_v13 = vadd.f32 %v849_v38, %v837_v3 }
 0x15a   : > { %1716 = vmatpush.bf16.msra.mxu0 %v3554_v14  ;;  %1729 = vmatpush.bf16.msra.mxu1 %v3556_v32 }
 0x15b   : > { %1742 = vmatpush.bf16.msra.mxu2 %v3560_v59  ;;  %1755 = vmatpush.bf16.msra.mxu3 %v3562_v11 }
 0x15c   : > { %v862_v27 = vpop.f32.mrf.mxu2  ;;  %v875_v47 = vpop.f32.mrf.mxu3 }
 0x15d   : > { %v863_v56 = vadd.f32 %v862_v27, %v3550_v62  ;;  %v838_v2 = vpop.f32.mrf.mxu0  ;;  %v851_v4 = vpop.f32.mrf.mxu1 }
 0x15e   : > { %1717 = vmatpush.bf16.msra.mxu0 %v3566_v50  ;;  %1730 = vmatpush.bf16.msra.mxu1 %v3568_v55 }
 0x15f   : > { %1743 = vmatpush.bf16.msra.mxu2 %v3572_v7  ;;  %1756 = vmatpush.bf16.msra.mxu3 %v3574_v8  ;;  %v3596_v49 = vadd.f32 %v875_v47, %v863_v56 }
 0x162   : > { %1718 = vmatpush.bf16.msra.mxu0 %v3578_v39  ;;  %1731 = vmatpush.bf16.msra.mxu1 %v3580_v42 }
 0x163   : > { %1744 = vmatpush.bf16.msra.mxu2 %v3585_v24  ;;  %1757 = vmatpush.bf16.msra.mxu3 %v3587_v25 }
 0x164   : > { %v864_v62 = vpop.f32.mrf.mxu2 }
 0x166   : > { %1719 = vmatpush.bf16.msra.mxu0 %v2656_v37  ;;  %1732 = vmatpush.bf16.msra.mxu1 %v2720_v36  ;;  %v1095_v54 = vpop.f32.mrf.mxu0  ;;  %v1108_v51 = vpop.f32.mrf.mxu1 }
 0x167   : > { %1745 = vmatpush.bf16.msra.mxu2 %v2660_v48  ;;  %1758 = vmatpush.bf16.msra.mxu3 %v2724_v26 }
 0x169   : > { %1720 = vmatmul.bf16.vlgmr.msra.gmra.mxu0 %v1548_v61  ;;  %1733 = vmatmul.bf16.vlgmr.msra.gmra.mxu1 %v1549_v17 }
 0x16a   : > { %1768 = vmatpush.bf16.msrb.mxu0 %v3502_v53  ;;  %1781 = vmatpush.bf16.msrb.mxu1 %v3504_v60  ;;  %v877_v53 = vpop.f32.mrf.mxu3  ;;  %v1109_v60 = vadd.f32 %v1108_v51, %v1095_v54 }
 0x16b   : > { %1794 = vmatpush.bf16.msrb.mxu2 %v3506_v28  ;;  %1807 = vmatpush.bf16.msrb.mxu3 %v3508_v29 }
 0x16c   : > { %1746 = vmatmul.bf16.vlgmr.msra.gmra.mxu2 %v1548_v61  ;;  %1759 = vmatmul.bf16.vlgmr.msra.gmra.mxu3 %v1549_v17 }
 0x16e   : > { %1769 = vmatpush.bf16.msrb.mxu0 %v3514_v10  ;;  %1782 = vmatpush.bf16.msrb.mxu1 %v3516_v16  ;;  %v1097_v16 = vpop.f32.mrf.mxu0 }
 0x16f   : > { %1795 = vmatpush.bf16.msrb.mxu2 %v3520_v43  ;;  %1808 = vmatpush.bf16.msrb.mxu3 %v3522_v45  ;;  %v1121_v28 = vpop.f32.mrf.mxu2  ;;  %v1110_v43 = vpop.f32.mrf.mxu1 }
 0x172   : > { %1770 = vmatpush.bf16.msrb.mxu0 %v3528_v40  ;;  %1783 = vmatpush.bf16.msrb.mxu1 %v3530_v41  ;;  %v1134_v29 = vpop.f32.mrf.mxu3  ;;  %v1764_v41 = vrot.slane %v3340_v34, 3 }
 0x173   : > { %1796 = vmatpush.bf16.msrb.mxu2 %v3534_v63  ;;  %1809 = vmatpush.bf16.msrb.mxu3 %v3536_v15  ;;  %v1135_v10 = vadd.f32 %v1134_v29, %v1121_v28  ;;  %v1765_v63 = vrot.slane %v3342_v44, 3  ;;  %v1511_v15 = vpop.permute.xlu1 %1510 }
 0x176   : > { %1771 = vmatpush.bf16.msrb.mxu0 %v3540_v31  ;;  %1784 = vmatpush.bf16.msrb.mxu1 %v3542_v35 }
 0x177   : > { %1797 = vmatpush.bf16.msrb.mxu2 %v3546_v46  ;;  %1810 = vmatpush.bf16.msrb.mxu3 %v3548_v57  ;;  %v1123_v45 = vpop.f32.mrf.mxu2 }
 0x17a   : > { %1772 = vmatpush.bf16.msrb.mxu0 %v3554_v14  ;;  %1785 = vmatpush.bf16.msrb.mxu1 %v3556_v32  ;;  %v1136_v40 = vpop.f32.mrf.mxu3  ;;  %v1198_v14 = vpop.permute.xlu0 %1197 }
 0x17b   : > { %1798 = vmatpush.bf16.msrb.mxu2 %v3560_v59  ;;  %1811 = vmatpush.bf16.msrb.mxu3 %v3562_v11  ;;  %v883_v59 = vpop.permute.xlu1 %882 }
 0x17c   : > { %v885_v11 = vadd.f32 %v883_v59, %v3589_v13  ;;  %v886_v23 = vadd.f32 %v883_v59, %v3596_v49 }
 0x17e   : > { %1773 = vmatpush.bf16.msrb.mxu0 %v3566_v50  ;;  %1786 = vmatpush.bf16.msrb.mxu1 %v3568_v55 }
 0x17f   : > { %1799 = vmatpush.bf16.msrb.mxu2 %v3572_v7  ;;  %1812 = vmatpush.bf16.msrb.mxu3 %v3574_v8 }
 0x182   : > { %1774 = vmatpush.bf16.msrb.mxu0 %v3578_v39  ;;  %1787 = vmatpush.bf16.msrb.mxu1 %v3580_v42 }
 0x183   : > { %1800 = vmatpush.bf16.msrb.mxu2 %v3585_v24  ;;  %1813 = vmatpush.bf16.msrb.mxu3 %v3587_v25 }
 0x186   : > { %1775 = vmatpush.bf16.msrb.mxu0 %v2656_v37  ;;  %1788 = vmatpush.bf16.msrb.mxu1 %v2720_v36  ;;  %v1151_v31 = vpop.f32.mrf.mxu0  ;;  %v1164_v35 = vpop.f32.mrf.mxu1 }
 0x187   : > { %1801 = vmatpush.bf16.msrb.mxu2 %v2660_v48  ;;  %1814 = vmatpush.bf16.msrb.mxu3 %v2724_v26  ;;  %v1152_v46 = vadd.f32 %v1151_v31, %v1109_v60 }
 0x189   : > { %1776 = vmatmul.bf16.vlgmr.msrb.gmra.mxu0 %v1764_v41  ;;  %1789 = vmatmul.bf16.vlgmr.msrb.gmra.mxu1 %v1765_v63  ;;  %v1165_v57 = vadd.f32 %v1164_v35, %v1152_v46 }
 0x18a   : > { %1802 = vmatmul.bf16.vlgmr.msrb.gmra.mxu2 %v1764_v41  ;;  %1815 = vmatmul.bf16.vlgmr.msrb.gmra.mxu3 %v1765_v63 }
 0x18b   : > { %v1200_v32 = vadd.f32 %v1198_v14, %v1165_v57 }
 0x18d   : > { %v1830_v50 = vrot.slane %v1200_v32, 6 }
 0x18e   : > { %v1153_v44 = vpop.f32.mrf.mxu0  ;;  %v1166_v8 = vpop.f32.mrf.mxu1 }
 0x18f   : > { %v1177_v55 = vpop.f32.mrf.mxu2  ;;  %v1190_v34 = vpop.f32.mrf.mxu3  ;;  %v1847_v18 = vsel %vm1846_vm1, %v885_v11, %v1830_v50 }
 0x190   : > { %v1178_v7 = vadd.f32 %v1177_v55, %v1135_v10 }
 0x192   : > { %v1191_v21 = vadd.f32 %v1190_v34, %v1178_v7 }
 0x194   : > { %v1201_v22 = vadd.f32 %v1198_v14, %v1191_v21 }
 0x196   : > { %v1831_v30 = vrot.slane %v1201_v22, 6 }
 0x197   : > { %v1179_v38 = vpop.f32.mrf.mxu2  ;;  %v1192_v39 = vpop.f32.mrf.mxu3 }
 0x198   : > { %v1848_v42 = vsel %vm1846_vm1, %v886_v23, %v1831_v30  ;;  %v1896_v23 = vpop.permute.xlu2 %1895  ;;  %v2074_v30 = vld [vmem:[%s3949_s7 + $0x8] sm:$0xff]  ;;  %v1869_v39 = vpop.permute.xlu1 %1868 }
 0x1a0   : > { %v1918_v38 = vpop.permute.xlu2 %1917 }
 0x1a6   : > { %v1408_v3 = vpop.f32.mrf.mxu0  ;;  %v1421_v0 = vpop.f32.mrf.mxu1 }
 0x1a7   : > { %v1422_v9 = vadd.f32 %v1421_v0, %v1408_v3  ;;  %v1865_v3 = vpop.permute.xlu0 %1864  ;;  %v1892_v0 = vpop.permute.xlu1 %1891 }
 0x1ae   : > { %v1410_v5 = vpop.f32.mrf.mxu0  ;;  %v1423_v6 = vpop.f32.mrf.mxu1 }
 0x1af   : > { %v1434_v24 = vpop.f32.mrf.mxu2  ;;  %v1447_v25 = vpop.f32.mrf.mxu3 }
 0x1b0   : > { %v1448_v1 = vadd.f32 %v1447_v25, %v1434_v24  ;;  %v1922_v24 = vpop.permute.xlu0 %1921  ;;  %v1948_v25 = vpop.permute.xlu1 %1947 }
 0x1b7   : > { %v1436_v13 = vpop.f32.mrf.mxu2  ;;  %v1449_v33 = vpop.f32.mrf.mxu3 }
 0x1b8   : > { %v1944_v5 = vpop.permute.xlu0 %1943  ;;  %v1970_v6 = vpop.permute.xlu1 %1969  ;;  %v1872_v33 = vlaneseq }
 0x1c6   : > { %v1464_v58 = vpop.f32.mrf.mxu0  ;;  %v1477_v12 = vpop.f32.mrf.mxu1 }
 0x1c7   : > { %v1465_v37 = vadd.f32 %v1464_v58, %v1422_v9  ;;  %v3684_v58 = vpop.permute.xlu0 %1999 }
 0x1c9   : > { %v1478_v36 = vadd.f32 %v1477_v12, %v1465_v37  ;;  %v3686_v12 = vpop.permute.xlu1 %2025  ;;  %v3688_v37 = vand.u32 127, %v1872_v33 }
 0x1cb   : > { %v1513_v48 = vadd.f32 %v1511_v15, %v1478_v36  ;;  %vm1874_vm4 = vcmp.lt.s32.totalorder %v3688_v37, 17  ;;  %vm1899_vm5 = vcmp.lt.s32.totalorder %v3688_v37, 16  ;;  %vm1925_vm6 = vcmp.lt.s32.totalorder %v3688_v37, 15 }
 0x1cc   : > { %vm1951_vm7 = vcmp.lt.s32.totalorder %v3688_v37, 1  ;;  %vm1977_vm8 = vcmp.lt.s32.totalorder %v3688_v37, 127  ;;  %vm2003_vm9 = vcmp.lt.s32.totalorder %v3688_v37, 113  ;;  %vm2029_vm10 = vcmp.lt.s32.totalorder %v3688_v37, 112 }
 0x1cd   : > { %v1836_v26 = vrot.slane %v1513_v48, 4  ;;  %v1879_v48 = vld [vmem:[%s3948_s6] sm:$0xff]  ;;  %vm2055_vm11 = vcmp.lt.s32.totalorder %v3688_v37, 111 }
 0x1ce   : > { %v1466_v2 = vpop.f32.mrf.mxu0  ;;  %v1479_v4 = vpop.f32.mrf.mxu1 }
 0x1cf   : > { %v1490_v27 = vpop.f32.mrf.mxu2  ;;  %v1503_v47 = vpop.f32.mrf.mxu3  ;;  %v1850_v49 = vsel %vm1849_vm2, %v1847_v18, %v1836_v26  ;;  %v1880_v26 = vld [vmem:[%s3948_s6 + $0x8] sm:$0xff] }
 0x1d0   : > { %v1491_v56 = vadd.f32 %v1490_v27, %v1448_v1  ;;  %v1875_v27 = vsel %vm1874_vm4, %v1865_v3, %v1869_v39  ;;  %v2782_v2 = vld [vmem:[%s3948_s6 + $0x88] sm:$0xff]  ;;  %v2022_v4 = vpop.permute.xlu0 %2021 }
 0x1d1   : > { %v2030_v33 = vsel %vm2029_vm10, %v2022_v4, %v3686_v12 }
 0x1d2   : > { %v1504_v61 = vadd.f32 %v1503_v47, %v1491_v56  ;;  %v1877_v47 = vsel %vm1874_vm4, %v1869_v39, %v1865_v3  ;;  %v2781_v56 = vld [vmem:[%s3948_s6 + $0x80] sm:$0xff] }
 0x1d4   : > { %v1514_v17 = vadd.f32 %v1511_v15, %v1504_v61  ;;  %v2785_v61 = vld [vmem:[%s3948_s6 + $0x20] sm:$0xff] }
 0x1d6   : > { %v1837_v62 = vrot.slane %v1514_v17, 4  ;;  %v2786_v17 = vld [vmem:[%s3948_s6 + $0x28] sm:$0xff] }
 0x1d7   : > { %v1492_v53 = vpop.f32.mrf.mxu2  ;;  %v1505_v54 = vpop.f32.mrf.mxu3 }
 0x1d8   : > { %v1851_v51 = vsel %vm1849_vm2, %v1848_v42, %v1837_v62  ;;  %v1974_v42 = vpop.permute.xlu2 %1973  ;;  %v1900_v62 = vsel %vm1899_vm5, %v1892_v0, %v1896_v23  ;;  %v1902_v53 = vsel %vm1899_vm5, %v1896_v23, %v1892_v0  ;;  %v2802_v0 = vld [vmem:[%s3948_s6 + $0xc8] sm:$0xff] }
 0x1e0   : > { %v3678_v9 = vpop.permute.xlu2 %1995 }
 0x1e6   : > { %v1721_v60 = vpop.f32.mrf.mxu0  ;;  %v1734_v28 = vpop.f32.mrf.mxu1 }
 0x1e7   : > { %v1735_v41 = vadd.f32 %v1734_v28, %v1721_v60  ;;  %v1884_v60 = vmul.f32 %v1880_v26, %v1875_v27  ;;  %v1861_v28 = vmul.f32 %v2782_v2, %v3248_v20  ;;  %v2790_v20 = vld [vmem:[%s3948_s6 + $0x48] sm:$0xff] }
 0x1e8   : > { %v3680_v1 = vpop.permute.xlu2 %2051 }
 0x1ee   : > { %v1723_v16 = vpop.f32.mrf.mxu0  ;;  %v1736_v43 = vpop.f32.mrf.mxu1 }
 0x1ef   : > { %v1747_v29 = vpop.f32.mrf.mxu2  ;;  %v1760_v10 = vpop.f32.mrf.mxu3  ;;  %v1910_v16 = vmul.f32 %v2786_v17, %v1900_v62 }
 0x1f0   : > { %v1761_v15 = vadd.f32 %v1760_v10, %v1747_v29  ;;  %v1860_v29 = vmul.f32 %v2781_v56, %v3246_v19  ;;  %v1909_v10 = vmul.f32 %v2785_v61, %v1902_v53  ;;  %v1926_v19 = vsel %vm1925_vm6, %v1918_v38, %v1922_v24  ;;  %v2810_v56 = vld [vmem:[%s3948_s6 + $0x108] sm:$0xff] }
 0x1f7   : > { %v1749_v45 = vpop.f32.mrf.mxu2  ;;  %v1762_v40 = vpop.f32.mrf.mxu3 }
 0x1f8   : > { %v1888_v45 = vadd.f32 %v1884_v60, %v1861_v28  ;;  %v2789_v40 = vld [vmem:[%s3948_s6 + $0x40] sm:$0xff] }
 0x206   : > { %v1777_v63 = vpop.f32.mrf.mxu0  ;;  %v1790_v31 = vpop.f32.mrf.mxu1 }
 0x207   : > { %v1778_v35 = vadd.f32 %v1777_v63, %v1735_v41  ;;  %v1928_v41 = vsel %vm1925_vm6, %v1922_v24, %v1918_v38  ;;  %v2793_v63 = vld [vmem:[%s3948_s6 + $0x60] sm:$0xff]  ;;  %v2004_v24 = vsel %vm2003_vm9, %v3678_v9, %v3684_v58 }
 0x209   : > { %v1791_v46 = vadd.f32 %v1790_v31, %v1778_v35  ;;  %v2794_v31 = vld [vmem:[%s3948_s6 + $0x68] sm:$0xff]  ;;  %v1952_v35 = vsel %vm1951_vm7, %v1944_v5, %v1948_v25 }
 0x20b   : > { %v1826_v57 = vadd.f32 %v3244_v52, %v1791_v46  ;;  %v1954_v46 = vsel %vm1951_vm7, %v1948_v25, %v1944_v5  ;;  %v2006_v25 = vsel %vm2003_vm9, %v3684_v58, %v3678_v9  ;;  %v2805_v5 = vld [vmem:[%s3948_s6 + $0xe0] sm:$0xff] }
 0x20c   : > { %v2809_v58 = vld [vmem:[%s3948_s6 + $0x100] sm:$0xff]  ;;  %v2014_v17 = vmul.f32 %v2802_v0, %v2006_v25  ;;  %v2039_v62 = vmul.f32 %v2805_v5, %v2030_v33  ;;  %v2796_v25 = vld [vmem:[%s3948_s6 + $0x78] sm:$0xff] }
 0x20d   : > { %v1842_v14 = vrot.slane %v1826_v57, 2  ;;  %v1803_v32 = vpop.f32.mrf.mxu2  ;;  %v1816_v59 = vpop.f32.mrf.mxu3 }
 0x20e   : > { %v1779_v11 = vpop.f32.mrf.mxu0  ;;  %v1792_v50 = vpop.f32.mrf.mxu1  ;;  %v1804_v34 = vadd.f32 %v1803_v32, %v1761_v15  ;;  %v1914_v15 = vadd.f32 %v1910_v16, %v1888_v45 }
 0x20f   : > { %v3634_v55 = vsel %vm1852_vm3, %v1850_v49, %v1842_v14  ;;  %v3710_v49 = vpop.permute.xlu1 %2047  ;;  %v2798_v11 = vld [vmem:[%s3948_s6 + $0xa8] sm:$0xff]  ;;  %v1978_v50 = vsel %vm1977_vm8, %v1970_v6, %v1974_v42 }
 0x210   : > { %1919 = vrot.lane.b32.xlu1 %v3634_v55, %s3035_s28  ;;  %1893 = vrot.lane.b32.xlu0 %v3634_v55, %s3033_s26  ;;  %v1817_v7 = vadd.f32 %v1816_v59, %v1804_v34  ;;  %v2797_v59 = vld [vmem:[%s3948_s6 + $0xa0] sm:$0xff]  ;;  %v1980_v34 = vsel %vm1977_vm8, %v1974_v42, %v1970_v6  ;;  %v2806_v6 = vld [vmem:[%s3948_s6 + $0xe8] sm:$0xff]  ;;  %v2056_v2 = vsel %vm2055_vm11, %v3710_v49, %v3680_v1 }
 0x211   : > { %1866 = vrot.lane.b32.xlu2 %v3634_v55, %s3034_s27  ;;  %v1988_v38 = vmul.f32 %v2798_v11, %v1980_v34  ;;  %v2801_v42 = vld [vmem:[%s3948_s6 + $0xc0] sm:$0xff]  ;;  %v2065_v28 = vmul.f32 %v2809_v58, %v2056_v2 }
 0x212   : > { %v1827_v18 = vadd.f32 %v3244_v52, %v1817_v7  ;;  %v2073_v52 = vld [vmem:[%s3949_s7] sm:$0xff]  ;;  %v2013_v61 = vmul.f32 %v2801_v42, %v2004_v24  ;;  %v2792_v42 = vld [vmem:[%s3948_s6 + $0x58] sm:$0xff]  ;;  %v2795_v24 = vld [vmem:[%s3948_s6 + $0x70] sm:$0xff] }
 0x214   : > { %v1843_v21 = vrot.slane %v1827_v18, 2  ;;  %v1961_v18 = vmul.f32 %v2793_v63, %v1954_v46  ;;  %v2783_v63 = vld [vmem:[%s3948_s6 + $0x90] sm:$0xff]  ;;  %v1882_v46 = vld [vmem:[%s3948_s6 + $0x18] sm:$0xff] }
 0x215   : > { %v1805_v44 = vpop.f32.mrf.mxu2  ;;  %v1818_v8 = vpop.f32.mrf.mxu3 }
 0x216   : > { %v3650_v22 = vsel %vm1852_vm3, %v1851_v51, %v1843_v21  ;;  %v1883_v51 = vmul.f32 %v1879_v48, %v1877_v47  ;;  %v1935_v44 = vmul.f32 %v2789_v40, %v1928_v41  ;;  %v1936_v8 = vmul.f32 %v2790_v20, %v1926_v19 }
 0x217   : > { %v1962_v21 = vmul.f32 %v2794_v31, %v1952_v35  ;;  %v2032_v48 = vsel %vm2029_vm10, %v3686_v12, %v2022_v4  ;;  %v2058_v12 = vsel %vm2055_vm11, %v3680_v1, %v3710_v49  ;;  %v2784_v31 = vld [vmem:[%s3948_s6 + $0x98] sm:$0xff]  ;;  %v1881_v35 = vld [vmem:[%s3948_s6 + $0x10] sm:$0xff] }
 0x218   : > { %1997 = vrot.lane.b32.xlu1 %v3634_v55, %s3038_s11  ;;  %1971 = vrot.lane.b32.xlu0 %v3634_v55, %s3036_s29  ;;  %v1887_v43 = vadd.f32 %v1883_v51, %v1860_v29  ;;  %v1940_v23 = vadd.f32 %v1936_v8, %v1914_v15  ;;  %v2040_v53 = vmul.f32 %v2806_v6, %v2032_v48  ;;  %v2787_v15 = vld [vmem:[%s3948_s6 + $0x30] sm:$0xff] }
 0x219   : > { %1945 = vrot.lane.b32.xlu2 %v3634_v55, %s3037_s30  ;;  %v2066_v29 = vmul.f32 %v2810_v56, %v2058_v12  ;;  %v1863_v8 = vmul.f32 %v2784_v31, %v3650_v22  ;;  %v2799_v48 = vld [vmem:[%s3948_s6 + $0xb0] sm:$0xff] }
 0x21a   : > { %v1913_v57 = vadd.f32 %v1909_v10, %v1887_v43  ;;  %v1966_v3 = vadd.f32 %v1962_v21, %v1940_v23 }
 0x21c   : > { %v1992_v27 = vadd.f32 %v1988_v38, %v1966_v3 }
 0x21e   : > { %v2018_v60 = vadd.f32 %v2014_v17, %v1992_v27 }
 0x220   : > { %1897 = vrot.lane.b32.xlu1 %v3650_v22, %s3033_s26  ;;  %2049 = vrot.lane.b32.xlu0 %v3634_v55, %s3039_s12  ;;  %v2044_v16 = vadd.f32 %v2040_v53, %v2018_v60  ;;  %v2804_v60 = vld [vmem:[%s3948_s6 + $0xd8] sm:$0xff] }
 0x221   : > { %2023 = vrot.lane.b32.xlu2 %v3634_v55, %s3040_s14 }
 0x222   : > { %v2070_v40 = vadd.f32 %v2066_v29, %v2044_v16 }
 0x228   : > { %1975 = vrot.lane.b32.xlu1 %v3650_v22, %s3036_s29  ;;  %1870 = vrot.lane.b32.xlu0 %v3650_v22, %s3034_s27 }
 0x229   : > { %1923 = vrot.lane.b32.xlu2 %v3650_v22, %s3035_s28 }
 0x230   : > { %2053 = vrot.lane.b32.xlu1 %v3650_v22, %s3039_s12  ;;  %1949 = vrot.lane.b32.xlu0 %v3650_v22, %s3037_s30 }
 0x231   : > { %2001 = vrot.lane.b32.xlu2 %v3650_v22, %s3038_s11  ;;  %s383_s11 = scalar_lea.vmem %s3952_s10, %s2815_s23 }
 0x238   : > { %2027 = vrot.lane.b32.xlu0 %v3650_v22, %s3040_s14 }
 0x239   : > { %2077 = vperm.xlu2 %2980, %v2073_v52   ;;  %v1939_v52 = vadd.f32 %v1935_v44, %v1913_v57 }
 0x23b   : > { %v1965_v39 = vadd.f32 %v1961_v18, %v1939_v52  ;;  %v1862_v18 = vmul.f32 %v2783_v63, %v3634_v55  ;;  %v2811_v63 = vld [vmem:[%s3948_s6 + $0x110] sm:$0xff] }
 0x240   : > { %2082 = vperm.xlu0 %2978, %v2074_v30   ;;  %v1987_v30 = vmul.f32 %v2797_v59, %v1978_v50  ;;  %v2788_v59 = vld [vmem:[%s3948_s6 + $0x38] sm:$0xff] }
 0x242   : > { %v1991_v26 = vadd.f32 %v1987_v30, %v1965_v39 }
 0x244   : > { %v2017_v51 = vadd.f32 %v2013_v61, %v1991_v26 }
 0x246   : > { %v2043_v10 = vadd.f32 %v2039_v62, %v2017_v51 }
 0x248   : > { %v2069_v45 = vadd.f32 %v2065_v28, %v2043_v10 }
 0x26b   : > { %v3682_v13 = vpop.permute.xlu2 %1866 }
 0x273   : > { %v3690_v36 = vpop.permute.xlu2 %1945 }
 0x27b   : > { %v3722_v54 = vpop.permute.xlu2 %2023 }
 0x282   : > { %v3749_v14 = vpop.permute.xlu1 %1919  ;;  %v3751_v32 = vpop.permute.xlu0 %1893 }
 0x283   : > { %v3763_v7 = vpop.permute.xlu2 %1923 }
 0x284   : > { %v1927_v55 = vsel %vm1925_vm6, %v3749_v14, %v3763_v7  ;;  %v1929_v22 = vsel %vm1925_vm6, %v3763_v7, %v3749_v14  ;;  %v2800_v14 = vld [vmem:[%s3948_s6 + $0xb8] sm:$0xff] }
 0x285   : > { %v1938_v6 = vmul.f32 %v2792_v42, %v1927_v55 }
 0x28a   : > { %v3794_v47 = vpop.permute.xlu1 %1997  ;;  %v1972_v9 = vpop.permute.xlu0 %1971 }
 0x28b   : > { %v3810_v4 = vpop.permute.xlu2 %2001 }
 0x28c   : > { %v2007_v28 = vsel %vm2003_vm9, %v3810_v4, %v3794_v47 }
 0x292   : > { %v3812_v43 = vpop.permute.xlu0 %2049  ;;  %v1898_v19 = vpop.permute.xlu1 %1897 }
 0x293   : > { %v2078_v20 = vpop.permute.xlu2 %2077  ;;  %v1901_v11 = vsel %vm1899_vm5, %v3751_v32, %v1898_v19  ;;  %v1903_v50 = vsel %vm1899_vm5, %v1898_v19, %v3751_v32  ;;  %v2791_v32 = vld [vmem:[%s3948_s6 + $0x50] sm:$0xff]  ;;  %v2016_v19 = vmul.f32 %v2804_v60, %v2007_v28 }
 0x294   : > { %v3814_v41 = vadd.f32 %v2078_v20, %v2069_v45  ;;  %v3816_v1 = vadd.f32 %v2078_v20, %v2070_v40  ;;  %v1911_v23 = vmul.f32 %v2787_v15, %v1903_v50  ;;  %v1912_v30 = vmul.f32 %v2788_v59, %v1901_v11  ;;  %v2807_v45 = vld [vmem:[%s3948_s6 + $0xf0] sm:$0xff]  ;;  %v2808_v40 = vld [vmem:[%s3948_s6 + $0xf8] sm:$0xff] }
 0x295   : > { %v1937_v5 = vmul.f32 %v2791_v32, %v1929_v22 }
 0x296   : > { %v2089_v49 = vadd.f32 %v3816_v1, %v3814_v41 }
 0x298   : > { %2090 = vadd.xlane.f32.xlu1 %v2089_v49 }
 0x29a   : > { %v1871_v57 = vpop.permute.xlu0 %1870  ;;  %v1976_v38 = vpop.permute.xlu1 %1975 }
 0x29b   : > { %v1876_v34 = vsel %vm1874_vm4, %v3682_v13, %v1871_v57  ;;  %v1878_v44 = vsel %vm1874_vm4, %v1871_v57, %v3682_v13  ;;  %v1979_v7 = vsel %vm1977_vm8, %v1972_v9, %v1976_v38  ;;  %v1981_v26 = vsel %vm1977_vm8, %v1976_v38, %v1972_v9  ;;  %v2803_v9 = vld [vmem:[%s3948_s6 + $0xd0] sm:$0xff] }
 0x29c   : > { %v1885_v21 = vmul.f32 %v1881_v35, %v1878_v44  ;;  %v1886_v52 = vmul.f32 %v1882_v46, %v1876_v34  ;;  %v1989_v17 = vmul.f32 %v2799_v48, %v1979_v7  ;;  %v1990_v62 = vmul.f32 %v2800_v14, %v1981_v26 }
 0x29d   : > { %v3041_v38 = vmov 256.0  }
 0x29e   : > { %v1889_v39 = vadd.f32 %v1885_v21, %v1862_v18  ;;  %v1890_v3 = vadd.f32 %v1886_v52, %v1863_v8  ;;  %2981 = vrcp.f32 %v3041_v38 }
 0x2a0   : > { %v1915_v13 = vadd.f32 %v1911_v23, %v1889_v39  ;;  %v1916_v0 = vadd.f32 %v1912_v30, %v1890_v3 }
 0x2a2   : > { %v1950_v33 = vpop.permute.xlu0 %1949  ;;  %v1941_v56 = vadd.f32 %v1937_v5, %v1915_v13  ;;  %v1942_v2 = vadd.f32 %v1938_v6, %v1916_v0  ;;  %v2054_v29 = vpop.permute.xlu1 %2053 }
 0x2a3   : > { %v1953_v27 = vsel %vm1951_vm7, %v3690_v36, %v1950_v33  ;;  %v1955_v58 = vsel %vm1951_vm7, %v1950_v33, %v3690_v36  ;;  %v2005_v36 = vsel %vm2003_vm9, %v3794_v47, %v3810_v4  ;;  %v2812_v47 = vld [vmem:[%s3948_s6 + $0x118] sm:$0xff]  ;;  %v2057_v4 = vsel %vm2055_vm11, %v3812_v43, %v2054_v29 }
 0x2a4   : > { %v1963_v12 = vmul.f32 %v2795_v24, %v1955_v58  ;;  %v1964_v61 = vmul.f32 %v2796_v25, %v1953_v27  ;;  %v2015_v20 = vmul.f32 %v2803_v9, %v2005_v36  ;;  %v2059_v31 = vsel %vm2055_vm11, %v2054_v29, %v3812_v43  ;;  %v2982_v39 = vpop.eup %2981 }
 0x2a5   : > { %v2067_v50 = vmul.f32 %v2811_v63, %v2057_v4  ;;  %v2068_v34 = vmul.f32 %v2812_v47, %v2059_v31  ;;  %v2096_v37 = vmul.f32 256.0, %v2982_v39  ;;  %vm2100_vm12 = vweird.f32 %v2982_v39 }
 0x2a6   : > { %v1967_v53 = vadd.f32 %v1963_v12, %v1941_v56  ;;  %v1968_v51 = vadd.f32 %v1964_v61, %v1942_v2 }
 0x2a8   : > { %v1993_v10 = vadd.f32 %v1989_v17, %v1967_v53  ;;  %v1994_v16 = vadd.f32 %v1990_v62, %v1968_v51  ;;  %v2146_v17 = vld [vmem:[%s3950_s8] sm:$0x3] }
 0x2a9   : > { %v2156_v53 = vld [vmem:[%s3951_s9] sm:$0x3]  ;;  %v2148_v9 = vperm.slane %v2146_v17, 0  ;;  %v2149_v60 = vperm.slane %v2146_v17, 1 }
 0x2aa   : > { %v2028_v49 = vpop.permute.xlu0 %2027  ;;  %v2019_v57 = vadd.f32 %v2015_v20, %v1993_v10  ;;  %v2020_v15 = vadd.f32 %v2016_v19, %v1994_v16  ;;  %v2158_v28 = vperm.slane %v2156_v53, 0  ;;  %v2159_v29 = vperm.slane %v2156_v53, 1 }
 0x2ab   : > { %v2031_v35 = vsel %vm2029_vm10, %v3722_v54, %v2028_v49  ;;  %v2033_v46 = vsel %vm2029_vm10, %v2028_v49, %v3722_v54  ;;  %v2097_v54 = vsub.f32 1.0, %v2096_v37 }
 0x2ac   : > { %v2041_v59 = vmul.f32 %v2807_v45, %v2031_v35  ;;  %v2042_v11 = vmul.f32 %v2808_v40, %v2033_v46 }
 0x2ad   : > { %v2098_v3 = vmul.f32 %v2982_v39, %v2097_v54 }
 0x2ae   : > { %v2045_v44 = vadd.f32 %v2041_v59, %v2019_v57  ;;  %v2046_v8 = vadd.f32 %v2042_v11, %v2020_v15 }
 0x2af   : > { %v2099_v32 = vadd.f32 %v2982_v39, %v2098_v3 }
 0x2b0   : > { %v2071_v18 = vadd.f32 %v2067_v50, %v2045_v44  ;;  %v2072_v21 = vadd.f32 %v2068_v34, %v2046_v8 }
 0x2b1   : > { %v2101_v42 = vsel %vm2100_vm12, %v2982_v39, %v2099_v32 }
 0x2b2   : > { %v2083_v52 = vpop.permute.xlu0 %2082 }
 0x2b3   : > { %v2087_v43 = vadd.f32 %v2083_v52, %v2071_v18  ;;  %v2088_v23 = vadd.f32 %v2083_v52, %v2072_v21 }
 0x2b5   : > { %v2092_v30 = vadd.f32 %v2088_v23, %v2087_v43 }
 0x2b7   : > { %2093 = vadd.xlane.f32.xlu2 %v2092_v30 }
 0x30b   : > { %v2091_v55 = vpop.xlane.xlu1 %2090 }
 0x30c   : > { %v2102_v22 = vmul.f32 %v2101_v42, %v2091_v55 }
 0x30e   : > { %v2104_v13 = vsub.f32 %v3814_v41, %v2102_v22  ;;  %v2105_v0 = vsub.f32 %v3816_v1, %v2102_v22 }
 0x310   : > { %v2108_v24 = vmul.f32 %v2104_v13, %v2104_v13  ;;  %v2109_v25 = vmul.f32 %v2105_v0, %v2105_v0 }
 0x312   : > { %v2112_v5 = vadd.f32 %v2109_v25, %v2108_v24 }
 0x314   : > { %2113 = vadd.xlane.f32.xlu0 %v2112_v5 }
 0x32a   : > { %v2094_v6 = vpop.xlane.xlu2 %2093 }
 0x32b   : > { %v2103_v33 = vmul.f32 %v2101_v42, %v2094_v6 }
 0x32d   : > { %v2106_v48 = vsub.f32 %v2087_v43, %v2103_v33  ;;  %v2107_v14 = vsub.f32 %v2088_v23, %v2103_v33 }
 0x32f   : > { %v2110_v7 = vmul.f32 %v2106_v48, %v2106_v48  ;;  %v2111_v26 = vmul.f32 %v2107_v14, %v2107_v14 }
 0x331   : > { %v2115_v27 = vadd.f32 %v2111_v26, %v2110_v7 }
 0x333   : > { %2116 = vadd.xlane.f32.xlu2 %v2115_v27 }
 0x387   : > { %v2114_v58 = vpop.xlane.xlu0 %2113 }
 0x388   : > { %v2118_v56 = vmul.f32 %v2114_v58, %v2101_v42 }
 0x38a   : > { %v2120_v2 = vadd.f32 1e-05, %v2118_v56 }
 0x38c   : > { %2983 = vrsqrt.f32 %v2120_v2  ;;  %vm2128_vm14 = vweird.f32 %v2120_v2 }
 0x392   : > { %v2984_v12 = vpop.eup %2983 }
 0x393   : > { %v2123_v41 = vmul.f32 %v2984_v12, %v2120_v2  ;;  %vm2129_vm13 = vweird.f32 %v2984_v12 }
 0x394   : > { %vm2130_vm15 = vmor %vm2128_vm14, %vm2129_vm13 }
 0x395   : > { %v2124_v61 = vmul.f32 %v2984_v12, %v2123_v41 }
 0x397   : > { %v2125_v1 = vmul.f32 0.5, %v2124_v61 }
 0x399   : > { %v2126_v62 = vsub.f32 1.5, %v2125_v1 }
 0x39b   : > { %v2127_v51 = vmul.f32 %v2984_v12, %v2126_v62 }
 0x39d   : > { %v2131_v36 = vsel %vm2130_vm15, %v2984_v12, %v2127_v51 }
 0x39e   : > { %v2142_v10 = vmul.f32 %v2131_v36, %v2104_v13  ;;  %v2143_v16 = vmul.f32 %v2131_v36, %v2105_v0 }
 0x3a0   : > { %v2152_v45 = vmul.f32 %v2148_v9, %v2142_v10  ;;  %v2153_v40 = vmul.f32 %v2149_v60, %v2143_v16 }
 0x3a2   : > { %v2162_v20 = vadd.f32 %v2158_v28, %v2152_v45  ;;  %v2163_v19 = vadd.f32 %v2159_v29, %v2153_v40 }
 0x3a4   : > { %2166 = vst [vmem:[%s383_s11] sm:$0xff] %v2162_v20 }
 0x3a5   : > { %2167 = vst [vmem:[%s383_s11 + $0x8] sm:$0xff] %v2163_v19 }
 0x3a6   : > { %v2117_v49 = vpop.xlane.xlu2 %2116 }
 0x3a7   : > { %v2119_v63 = vmul.f32 %v2117_v49, %v2101_v42 }
 0x3a9   : > { %v2121_v47 = vadd.f32 1e-05, %v2119_v63 }
 0x3ab   : > { %2985 = vrsqrt.f32 %v2121_v47  ;;  %vm2138_vm1 = vweird.f32 %v2121_v47 }
 0x3b1   : > { %v2986_v4 = vpop.eup %2985 }
 0x3b2   : > { %v2133_v31 = vmul.f32 %v2986_v4, %v2121_v47  ;;  %vm2139_vm0 = vweird.f32 %v2986_v4 }
 0x3b3   : > { %vm2140_vm2 = vmor %vm2138_vm1, %vm2139_vm0 }
 0x3b4   : > { %v2134_v35 = vmul.f32 %v2986_v4, %v2133_v31 }
 0x3b6   : > { %v2135_v46 = vmul.f32 0.5, %v2134_v35 }
 0x3b8   : > { %v2136_v57 = vsub.f32 1.5, %v2135_v46 }
 0x3ba   : > { %v2137_v15 = vmul.f32 %v2986_v4, %v2136_v57 }
 0x3bc   : > { %v2141_v59 = vsel %vm2140_vm2, %v2986_v4, %v2137_v15 }
 0x3bd   : > { %v2144_v11 = vmul.f32 %v2141_v59, %v2106_v48  ;;  %v2145_v50 = vmul.f32 %v2141_v59, %v2107_v14 }
 0x3bf   : > { %v2154_v34 = vmul.f32 %v2148_v9, %v2144_v11  ;;  %v2155_v44 = vmul.f32 %v2149_v60, %v2145_v50 }
 0x3c1   : > { %v2164_v8 = vadd.f32 %v2158_v28, %v2154_v34  ;;  %v2165_v18 = vadd.f32 %v2159_v29, %v2155_v44 }
 0x3c3   : > { %2168 = vst [vmem:[%s383_s11 + $0x10] sm:$0xff] %v2164_v8 }
 0x3c4   : > { %2169 = vst [vmem:[%s383_s11 + $0x18] sm:$0xff] %v2165_v18 }
 0x3c5 PF: > { %s21_s13 = sadd.s32 1, %s3027_s13  }
 0x3c6   : > { %p18_p7 = scmp.ge.s32.totalorder %s21_s13, 4  }
 0x3c8   :  { %20 = sbr.rel (!%p18_p7) target bundleno = 1 (0x1), region = 106 }
 0x3cd   :  { %2194 = vsyncpa [#allocation3], 1 }
 0x3ce   :  { %2196 = vsyncpa [#allocation3 + $0x1], 1 }

</bundles_post_ra>
